<compile_context>
chip_gen: v7x
topology: tpu7x:2x2x1
jax: 0.10.0
libtpu: 0.0.40
codegen_flags: <defaults>
</compile_context>

<pallas_src>
import functools
import math

import jax
import jax.numpy as jnp
from jax.experimental import pallas as pl
from jax.experimental.pallas import tpu as pltpu


# --------------------------------------------------------------------------
# Fused encoder-layer kernel body (one batch-block per grid step)
# --------------------------------------------------------------------------
def _layernorm(x, gamma, beta, eps=1e-5):
    mean = jnp.mean(x, axis=-1, keepdims=True)
    xc = x - mean
    var = jnp.mean(xc * xc, axis=-1, keepdims=True)
    return xc * jax.lax.rsqrt(var + eps) * gamma + beta


def _encoder_layer_body(
    src_ref, pos_ref,
    wqk_ref, bqk_ref, wv_ref, bv_ref,
    wo_ref, bo_ref,
    g1_ref, be1_ref,
    w1_ref, b1_ref, w2_ref, b2_ref,
    g2_ref, be2_ref,
    o_ref,
    *, nhead,
):
    Bt, L, D = src_ref.shape
    M = Bt * L
    dh = D // nhead
    cdt = wqk_ref.dtype                       # matmul-input dtype (bf16)

    # Residual path stays f32; (Bt, L, D) -> (Bt*L, D) is a free collapse.
    x = src_ref[...].reshape(M, D).astype(jnp.float32)
    if pos_ref is None:
        qk_in = x.astype(cdt)
    else:
        qk_in = (x + pos_ref[...].reshape(M, D).astype(jnp.float32)).astype(cdt)

    # Fused Q|K projection: one (M, D) @ (D, 2D) matmul (N = 2D MXU fill).
    # The 1/sqrt(dh) score scale is pre-folded into Wq / bq.
    qk = jnp.dot(qk_in, wqk_ref[...], preferred_element_type=jnp.float32) + bqk_ref[...]
    v = jnp.dot(x.astype(cdt), wv_ref[...], preferred_element_type=jnp.float32) + bv_ref[...]

    q = qk[:, :D].astype(cdt).reshape(Bt, L, D)      # lane-aligned 128 split
    k = qk[:, D:].astype(cdt).reshape(Bt, L, D)
    v = v.astype(cdt).reshape(Bt, L, D)

    # Multi-head attention. Per-head outputs are packed back head-contiguously
    # so the out-projection is a single K=D matmul over all rows.
    ctx_rows = []
    for b in range(Bt):
        heads = []
        for h in range(nhead):
            lo = h * dh
            qh = q[b, :, lo:lo + dh]
            kh = k[b, :, lo:lo + dh]
            vh = v[b, :, lo:lo + dh]
            s = jax.lax.dot_general(                  # q @ k^T (scale folded in)
                qh, kh, (((1,), (1,)), ((), ())),
                preferred_element_type=jnp.float32)
            s = s - jnp.max(s, axis=-1, keepdims=True)
            e = jnp.exp(s)
            p = e * pl.reciprocal(jnp.sum(e, axis=-1, keepdims=True), approx=True)
            oh = jnp.dot(p.astype(cdt), vh, preferred_element_type=jnp.float32)
            heads.append(oh)                          # (L, dh) f32
        ctx_rows.append(jnp.concatenate(heads, axis=-1))   # (L, D) f32
    ctx = jnp.concatenate(ctx_rows, axis=0).astype(cdt)    # (M, D)

    attn = jnp.dot(ctx, wo_ref[...], preferred_element_type=jnp.float32) + bo_ref[...]

    # Residual + LayerNorm1 (dropout1 = identity at inference), f32 stats.
    r1 = _layernorm(x + attn, g1_ref[...], be1_ref[...])

    # FFN: linear1 -> relu -> linear2 (dropout = identity).
    h1 = jnp.dot(r1.astype(cdt), w1_ref[...], preferred_element_type=jnp.float32) + b1_ref[...]
    h1 = jnp.maximum(h1, 0.0)
    h2 = jnp.dot(h1.astype(cdt), w2_ref[...], preferred_element_type=jnp.float32) + b2_ref[...]

    # Residual + LayerNorm2 (dropout2 = identity).
    out = _layernorm(r1 + h2, g2_ref[...], be2_ref[...])
    o_ref[...] = out.reshape(Bt, L, D).astype(o_ref.dtype)


def _make_kernel(nhead, has_pos):
    def kernel(*refs):
        if has_pos:
            src_ref, pos_ref, *rest = refs
        else:
            src_ref, *rest = refs
            pos_ref = None
        _encoder_layer_body(src_ref, pos_ref, *rest, nhead=nhead)
    return kernel


# --------------------------------------------------------------------------
# One-time parameter preprocessing (hoisted out of the per-call path):
# PyTorch orientation -> matmul orientation, Wq|Wk fusion, scale folding,
# bf16 weight casts.
# --------------------------------------------------------------------------
def prepare_params(params, *, nhead, compute_dtype=jnp.bfloat16):
    D = params["out_proj_weight"].shape[0]
    F = params["linear1_weight"].shape[0]
    dh = D // nhead
    scale = 1.0 / math.sqrt(dh)
    ipw = params["in_proj_weight"].astype(jnp.float32)
    ipb = params["in_proj_bias"].astype(jnp.float32)
    wq, wk, wv = ipw[:D].T, ipw[D:2 * D].T, ipw[2 * D:].T
    bq, bk, bv = ipb[:D], ipb[D:2 * D], ipb[2 * D:]
    return {
        "wqk": jnp.concatenate([wq * scale, wk], axis=1).astype(compute_dtype),
        "bqk": jnp.concatenate([bq * scale, bk]).reshape(1, 2 * D).astype(jnp.float32),
        "wv": wv.astype(compute_dtype),
        "bv": bv.reshape(1, D).astype(jnp.float32),
        "wo": params["out_proj_weight"].T.astype(compute_dtype),
        "bo": params["out_proj_bias"].reshape(1, D).astype(jnp.float32),
        "g1": params["norm1_weight"].reshape(1, D).astype(jnp.float32),
        "be1": params["norm1_bias"].reshape(1, D).astype(jnp.float32),
        "w1": params["linear1_weight"].T.astype(compute_dtype),
        "b1": params["linear1_bias"].reshape(1, F).astype(jnp.float32),
        "w2": params["linear2_weight"].T.astype(compute_dtype),
        "b2": params["linear2_bias"].reshape(1, D).astype(jnp.float32),
        "g2": params["norm2_weight"].reshape(1, D).astype(jnp.float32),
        "be2": params["norm2_bias"].reshape(1, D).astype(jnp.float32),
    }


# --------------------------------------------------------------------------
# Wrapper: PyTorch (L, B, D) layout in/out (or batch_first=True to skip the
# HBM transposes), prepared params from prepare_params().
# --------------------------------------------------------------------------
def transformer_encoder_layer(src, pos, prepared, *, nhead, batch_first=False,
                              block_batch=None):
    if batch_first:
        x, pe = src, pos
    else:
        # TODO(synk): pass batch-first activations upstream to skip these
        # glue transposes entirely (use batch_first=True).
        x = jnp.transpose(src, (1, 0, 2))
        pe = None if pos is None else jnp.transpose(pos, (1, 0, 2))

    B, L, D = x.shape
    F = prepared["w1"].shape[1]
    assert D % nhead == 0
    has_pos = pe is not None

    Bt = B if block_batch is None else block_batch
    assert B % Bt == 0, "batch must be divisible by block_batch"

    def batched():
        return pl.BlockSpec((Bt, L, D), lambda i: (i, 0, 0))

    def resident(shape):
        # constant index_map => fetched once, stays resident across the grid
        return pl.BlockSpec(shape, lambda i: (0,) * len(shape))

    act_specs = [batched()] + ([batched()] if has_pos else [])
    weight_specs = [
        resident((D, 2 * D)), resident((1, 2 * D)),      # wqk bqk
        resident((D, D)), resident((1, D)),              # wv bv
        resident((D, D)), resident((1, D)),              # wo bo
        resident((1, D)), resident((1, D)),              # ln1 gamma/beta
        resident((D, F)), resident((1, F)),              # w1 b1
        resident((F, D)), resident((1, D)),              # w2 b2
        resident((1, D)), resident((1, D)),              # ln2 gamma/beta
    ]
    act_args = [x] + ([pe] if has_pos else [])
    weight_args = [
        prepared["wqk"], prepared["bqk"], prepared["wv"], prepared["bv"],
        prepared["wo"], prepared["bo"], prepared["g1"], prepared["be1"],
        prepared["w1"], prepared["b1"], prepared["w2"], prepared["b2"],
        prepared["g2"], prepared["be2"],
    ]

    out = pl.pallas_call(
        _make_kernel(nhead, has_pos),
        out_shape=jax.ShapeDtypeStruct((B, L, D), src.dtype),
        grid_spec=pltpu.PrefetchScalarGridSpec(
            num_scalar_prefetch=0,
            grid=(B // Bt,),
            in_specs=act_specs + weight_specs,
            out_specs=pl.BlockSpec((Bt, L, D), lambda i: (i, 0, 0)),
        ),
        compiler_params=pltpu.CompilerParams(
            dimension_semantics=("parallel",),
            # 56 MiB: above the 16/32 MiB scoped defaults, still safe on v7x
            # (64 MiB physical VMEM per TensorCore).
            vmem_limit_bytes=56 * 1024 * 1024,
        ),
    )(*act_args, *weight_args)

    return out if batch_first else jnp.transpose(out, (1, 0, 2))


# --------------------------------------------------------------------------
# Pure-JAX reference (for correctness check)
# --------------------------------------------------------------------------
def _reference_forward(src, pos, params, nhead):
    L, B, D = src.shape
    dh = D // nhead
    ipw, ipb = params["in_proj_weight"], params["in_proj_bias"]
    x = src.astype(jnp.float32)
    qk = x + pos
    q = qk @ ipw[:D].T + ipb[:D]
    k = qk @ ipw[D:2 * D].T + ipb[D:2 * D]
    v = x @ ipw[2 * D:].T + ipb[2 * D:]

    def heads(t):                                     # (L,B,D) -> (B,H,L,dh)
        return jnp.transpose(t.reshape(L, B, nhead, dh), (1, 2, 0, 3))

    qh, kh, vh = heads(q), heads(k), heads(v)
    s = jnp.einsum("bhld,bhmd->bhlm", qh, kh) / math.sqrt(dh)
    p = jax.nn.softmax(s, axis=-1)
    o = jnp.einsum("bhlm,bhmd->bhld", p, vh)
    o = jnp.transpose(o, (2, 0, 1, 3)).reshape(L, B, D)
    attn = o @ params["out_proj_weight"].T + params["out_proj_bias"]

    def ln(t, g, b):
        m = jnp.mean(t, -1, keepdims=True)
        var = jnp.mean((t - m) ** 2, -1, keepdims=True)
        return (t - m) * jax.lax.rsqrt(var + 1e-5) * g + b

    r1 = ln(x + attn, params["norm1_weight"], params["norm1_bias"])
    h = jax.nn.relu(r1 @ params["linear1_weight"].T + params["linear1_bias"])
    h = h @ params["linear2_weight"].T + params["linear2_bias"]
    return ln(r1 + h, params["norm2_weight"], params["norm2_bias"])


# --------------------------------------------------------------------------
# Deterministic parameter construction (PyTorch-style shapes)
# --------------------------------------------------------------------------
def make_params(key, d_model, dim_feedforward):
    ks = jax.random.split(key, 8)
    s = 1.0 / math.sqrt(d_model)
    sf = 1.0 / math.sqrt(dim_feedforward)
    return {
        "in_proj_weight": jax.random.uniform(ks[0], (3 * d_model, d_model), jnp.float32, -s, s),
        "in_proj_bias": jax.random.uniform(ks[1], (3 * d_model,), jnp.float32, -s, s),
        "out_proj_weight": jax.random.uniform(ks[2], (d_model, d_model), jnp.float32, -s, s),
        "out_proj_bias": jnp.zeros((d_model,), jnp.float32),
        "linear1_weight": jax.random.uniform(ks[3], (dim_feedforward, d_model), jnp.float32, -s, s),
        "linear1_bias": jax.random.uniform(ks[4], (dim_feedforward,), jnp.float32, -s, s),
        "linear2_weight": jax.random.uniform(ks[5], (d_model, dim_feedforward), jnp.float32, -sf, sf),
        "linear2_bias": jax.random.uniform(ks[6], (d_model,), jnp.float32, -sf, sf),
        "norm1_weight": jnp.ones((d_model,), jnp.float32),
        "norm1_bias": jnp.zeros((d_model,), jnp.float32),
        "norm2_weight": jnp.ones((d_model,), jnp.float32),
        "norm2_bias": jnp.zeros((d_model,), jnp.float32),
    }


if __name__ == "__main__":
    # Small, lane-dense sizes: d_model and dim_feedforward multiples of 128.
    L, B, D = 16, 2, 128
    nhead = 4
    dim_feedforward = 256

    key = jax.random.PRNGKey(0)
    k_src, k_pos, k_par = jax.random.split(key, 3)
    src = jax.random.normal(k_src, (L, B, D), jnp.float32)
    pos = 0.1 * jax.random.normal(k_pos, (L, B, D), jnp.float32)
    params = make_params(k_par, D, dim_feedforward)

    # Hoisted out of the per-call path: done once, reused across forward calls.
    prepared = prepare_params(params, nhead=nhead)

    fwd = jax.jit(functools.partial(transformer_encoder_layer, nhead=nhead))
    out = jax.block_until_ready(fwd(src, pos, prepared))

    assert out.shape == (L, B, D), out.shape
    assert bool(jnp.all(jnp.isfinite(out)))

    ref = _reference_forward(src, pos, params, nhead)
    err = float(jnp.max(jnp.abs(out - ref)))
    # bf16 MXU inputs (f32 accumulation) => a few 1e-2 max-abs deviation vs the
    # pure-f32 reference is expected and acceptable.
    assert err < 6e-2, f"max abs err vs reference = {err}"
    print("KERNEL_OK")
</pallas_src>

<mosaic_0001>
module attributes {stable_mosaic.version = 11 : i64} {
  func.func @kernel(%arg0: i32, %arg1: memref<2x16x128xf32, #tpu.memory_space<vmem>>, %arg2: memref<2x16x128xf32, #tpu.memory_space<vmem>>, %arg3: memref<128x256xbf16, #tpu.memory_space<vmem>>, %arg4: memref<1x256xf32, #tpu.memory_space<vmem>>, %arg5: memref<128x128xbf16, #tpu.memory_space<vmem>>, %arg6: memref<1x128xf32, #tpu.memory_space<vmem>>, %arg7: memref<128x128xbf16, #tpu.memory_space<vmem>>, %arg8: memref<1x128xf32, #tpu.memory_space<vmem>>, %arg9: memref<1x128xf32, #tpu.memory_space<vmem>>, %arg10: memref<1x128xf32, #tpu.memory_space<vmem>>, %arg11: memref<128x256xbf16, #tpu.memory_space<vmem>>, %arg12: memref<1x256xf32, #tpu.memory_space<vmem>>, %arg13: memref<256x128xbf16, #tpu.memory_space<vmem>>, %arg14: memref<1x128xf32, #tpu.memory_space<vmem>>, %arg15: memref<1x128xf32, #tpu.memory_space<vmem>>, %arg16: memref<1x128xf32, #tpu.memory_space<vmem>>, %arg17: memref<2x16x128xf32, #tpu.memory_space<vmem>>) attributes {dimension_semantics = [#tpu.dimension_semantics<parallel>], iteration_bounds = array<i64: 1>, scalar_prefetch = 0 : i64, scratch_operands = 0 : i64, tpu.core_type = #tpu.core_type<tc>, window_params = [{transform_indices = @transform_0, window_bounds = array<i64: 2, 16, 128>}, {transform_indices = @transform_1, window_bounds = array<i64: 2, 16, 128>}, {pipeline_mode = #tpu.pipeline_mode<synchronous>, transform_indices = @transform_2, window_bounds = array<i64: 128, 256>}, {pipeline_mode = #tpu.pipeline_mode<synchronous>, transform_indices = @transform_3, window_bounds = array<i64: 1, 256>}, {pipeline_mode = #tpu.pipeline_mode<synchronous>, transform_indices = @transform_4, window_bounds = array<i64: 128, 128>}, {pipeline_mode = #tpu.pipeline_mode<synchronous>, transform_indices = @transform_5, window_bounds = array<i64: 1, 128>}, {pipeline_mode = #tpu.pipeline_mode<synchronous>, transform_indices = @transform_6, window_bounds = array<i64: 128, 128>}, {pipeline_mode = #tpu.pipeline_mode<synchronous>, transform_indices = @transform_7, window_bounds = array<i64: 1, 128>}, {pipeline_mode = #tpu.pipeline_mode<synchronous>, transform_indices = @transform_8, window_bounds = array<i64: 1, 128>}, {pipeline_mode = #tpu.pipeline_mode<synchronous>, transform_indices = @transform_9, window_bounds = array<i64: 1, 128>}, {pipeline_mode = #tpu.pipeline_mode<synchronous>, transform_indices = @transform_10, window_bounds = array<i64: 128, 256>}, {pipeline_mode = #tpu.pipeline_mode<synchronous>, transform_indices = @transform_11, window_bounds = array<i64: 1, 256>}, {pipeline_mode = #tpu.pipeline_mode<synchronous>, transform_indices = @transform_12, window_bounds = array<i64: 256, 128>}, {pipeline_mode = #tpu.pipeline_mode<synchronous>, transform_indices = @transform_13, window_bounds = array<i64: 1, 128>}, {pipeline_mode = #tpu.pipeline_mode<synchronous>, transform_indices = @transform_14, window_bounds = array<i64: 1, 128>}, {pipeline_mode = #tpu.pipeline_mode<synchronous>, transform_indices = @transform_15, window_bounds = array<i64: 1, 128>}, {transform_indices = @transform_16, window_bounds = array<i64: 2, 16, 128>}]} {
    %c0 = arith.constant 0 : index
    %c0_0 = arith.constant 0 : index
    %c0_1 = arith.constant 0 : index
    %0 = vector.load %arg1[%c0, %c0_0, %c0_1] : memref<2x16x128xf32, #tpu.memory_space<vmem>>, vector<2x16x128xf32>
    %1 = vector.shape_cast %0 : vector<2x16x128xf32> to vector<32x128xf32>
    %c0_2 = arith.constant 0 : index
    %c0_3 = arith.constant 0 : index
    %c0_4 = arith.constant 0 : index
    %2 = vector.load %arg2[%c0_2, %c0_3, %c0_4] : memref<2x16x128xf32, #tpu.memory_space<vmem>>, vector<2x16x128xf32>
    %3 = vector.shape_cast %2 : vector<2x16x128xf32> to vector<32x128xf32>
    %4 = arith.addf %1, %3 : vector<32x128xf32>
    %5 = arith.truncf %4 : vector<32x128xf32> to vector<32x128xbf16>
    %c0_5 = arith.constant 0 : index
    %c0_6 = arith.constant 0 : index
    %6 = vector.load %arg3[%c0_5, %c0_6] : memref<128x256xbf16, #tpu.memory_space<vmem>>, vector<128x256xbf16>
    %cst = arith.constant dense<0.000000e+00> : vector<32x256xf32>
    %7 = tpu.matmul %5, %6, %cst {dimension_numbers = #tpu.dot_dimension_numbers<[1], [0], [0], [1], [0, 0, 1, 1], [], []>} : vector<32x128xbf16>, vector<128x256xbf16>, vector<32x256xf32> -> vector<32x256xf32>
    %c0_7 = arith.constant 0 : index
    %c0_8 = arith.constant 0 : index
    %8 = vector.load %arg4[%c0_7, %c0_8] : memref<1x256xf32, #tpu.memory_space<vmem>>, vector<1x256xf32>
    %9 = vector.broadcast %8 : vector<1x256xf32> to vector<32x256xf32>
    %10 = arith.addf %7, %9 : vector<32x256xf32>
    %11 = arith.truncf %1 : vector<32x128xf32> to vector<32x128xbf16>
    %c0_9 = arith.constant 0 : index
    %c0_10 = arith.constant 0 : index
    %12 = vector.load %arg5[%c0_9, %c0_10] : memref<128x128xbf16, #tpu.memory_space<vmem>>, vector<128x128xbf16>
    %cst_11 = arith.constant dense<0.000000e+00> : vector<32x128xf32>
    %13 = tpu.matmul %11, %12, %cst_11 {dimension_numbers = #tpu.dot_dimension_numbers<[1], [0], [0], [1], [0, 0, 1, 1], [], []>} : vector<32x128xbf16>, vector<128x128xbf16>, vector<32x128xf32> -> vector<32x128xf32>
    %c0_12 = arith.constant 0 : index
    %c0_13 = arith.constant 0 : index
    %14 = vector.load %arg6[%c0_12, %c0_13] : memref<1x128xf32, #tpu.memory_space<vmem>>, vector<1x128xf32>
    %15 = vector.broadcast %14 : vector<1x128xf32> to vector<32x128xf32>
    %16 = arith.addf %13, %15 : vector<32x128xf32>
    %17 = vector.extract_strided_slice %10 {offsets = [0, 0], sizes = [32, 128], strides = [1, 1]} : vector<32x256xf32> to vector<32x128xf32>
    %18 = arith.truncf %17 : vector<32x128xf32> to vector<32x128xbf16>
    %19 = vector.shape_cast %18 : vector<32x128xbf16> to vector<2x16x128xbf16>
    %20 = vector.extract_strided_slice %10 {offsets = [0, 128], sizes = [32, 128], strides = [1, 1]} : vector<32x256xf32> to vector<32x128xf32>
    %21 = arith.truncf %20 : vector<32x128xf32> to vector<32x128xbf16>
    %22 = vector.shape_cast %21 : vector<32x128xbf16> to vector<2x16x128xbf16>
    %23 = arith.truncf %16 : vector<32x128xf32> to vector<32x128xbf16>
    %24 = vector.shape_cast %23 : vector<32x128xbf16> to vector<2x16x128xbf16>
    %25 = vector.extract_strided_slice %19 {offsets = [0, 0, 0], sizes = [1, 16, 32], strides = [1, 1, 1]} : vector<2x16x128xbf16> to vector<1x16x32xbf16>
    %26 = vector.shape_cast %25 : vector<1x16x32xbf16> to vector<16x32xbf16>
    %27 = vector.extract_strided_slice %22 {offsets = [0, 0, 0], sizes = [1, 16, 32], strides = [1, 1, 1]} : vector<2x16x128xbf16> to vector<1x16x32xbf16>
    %28 = vector.shape_cast %27 : vector<1x16x32xbf16> to vector<16x32xbf16>
    %29 = vector.extract_strided_slice %24 {offsets = [0, 0, 0], sizes = [1, 16, 32], strides = [1, 1, 1]} : vector<2x16x128xbf16> to vector<1x16x32xbf16>
    %30 = vector.shape_cast %29 : vector<1x16x32xbf16> to vector<16x32xbf16>
    %cst_14 = arith.constant dense<0.000000e+00> : vector<16x16xf32>
    %31 = tpu.matmul %26, %28, %cst_14 {dimension_numbers = #tpu.dot_dimension_numbers<[1], [1], [0], [0], [0, 0, 1, 0], [], []>} : vector<16x32xbf16>, vector<16x32xbf16>, vector<16x16xf32> -> vector<16x16xf32>
    %cst_15 = arith.constant dense<0xFF800000> : vector<16xf32>
    %32 = vector.multi_reduction <maximumf>, %31, %cst_15 [1] : vector<16x16xf32> to vector<16xf32>
    %33 = vector.shape_cast %32 : vector<16xf32> to vector<16x1xf32>
    %34 = vector.broadcast %33 : vector<16x1xf32> to vector<16x16xf32>
    %35 = arith.subf %31, %34 : vector<16x16xf32>
    %36 = math.exp %35 : vector<16x16xf32>
    %cst_16 = arith.constant dense<0.000000e+00> : vector<16xf32>
    %37 = vector.multi_reduction <add>, %36, %cst_16 [1] : vector<16x16xf32> to vector<16xf32>
    %38 = vector.shape_cast %37 : vector<16xf32> to vector<16x1xf32>
    %39 = tpu.reciprocal %38 {approx = true} : vector<16x1xf32> -> vector<16x1xf32>
    %40 = vector.broadcast %39 : vector<16x1xf32> to vector<16x16xf32>
    %41 = arith.mulf %36, %40 : vector<16x16xf32>
    %42 = arith.truncf %41 : vector<16x16xf32> to vector<16x16xbf16>
    %cst_17 = arith.constant dense<0.000000e+00> : vector<16x32xf32>
    %43 = tpu.matmul %42, %30, %cst_17 {dimension_numbers = #tpu.dot_dimension_numbers<[1], [0], [0], [1], [0, 0, 1, 1], [], []>} : vector<16x16xbf16>, vector<16x32xbf16>, vector<16x32xf32> -> vector<16x32xf32>
    %44 = vector.extract_strided_slice %19 {offsets = [0, 0, 32], sizes = [1, 16, 32], strides = [1, 1, 1]} : vector<2x16x128xbf16> to vector<1x16x32xbf16>
    %45 = vector.shape_cast %44 : vector<1x16x32xbf16> to vector<16x32xbf16>
    %46 = vector.extract_strided_slice %22 {offsets = [0, 0, 32], sizes = [1, 16, 32], strides = [1, 1, 1]} : vector<2x16x128xbf16> to vector<1x16x32xbf16>
    %47 = vector.shape_cast %46 : vector<1x16x32xbf16> to vector<16x32xbf16>
    %48 = vector.extract_strided_slice %24 {offsets = [0, 0, 32], sizes = [1, 16, 32], strides = [1, 1, 1]} : vector<2x16x128xbf16> to vector<1x16x32xbf16>
    %49 = vector.shape_cast %48 : vector<1x16x32xbf16> to vector<16x32xbf16>
    %cst_18 = arith.constant dense<0.000000e+00> : vector<16x16xf32>
    %50 = tpu.matmul %45, %47, %cst_18 {dimension_numbers = #tpu.dot_dimension_numbers<[1], [1], [0], [0], [0, 0, 1, 0], [], []>} : vector<16x32xbf16>, vector<16x32xbf16>, vector<16x16xf32> -> vector<16x16xf32>
    %cst_19 = arith.constant dense<0xFF800000> : vector<16xf32>
    %51 = vector.multi_reduction <maximumf>, %50, %cst_19 [1] : vector<16x16xf32> to vector<16xf32>
    %52 = vector.shape_cast %51 : vector<16xf32> to vector<16x1xf32>
    %53 = vector.broadcast %52 : vector<16x1xf32> to vector<16x16xf32>
    %54 = arith.subf %50, %53 : vector<16x16xf32>
    %55 = math.exp %54 : vector<16x16xf32>
    %cst_20 = arith.constant dense<0.000000e+00> : vector<16xf32>
    %56 = vector.multi_reduction <add>, %55, %cst_20 [1] : vector<16x16xf32> to vector<16xf32>
    %57 = vector.shape_cast %56 : vector<16xf32> to vector<16x1xf32>
    %58 = tpu.reciprocal %57 {approx = true} : vector<16x1xf32> -> vector<16x1xf32>
    %59 = vector.broadcast %58 : vector<16x1xf32> to vector<16x16xf32>
    %60 = arith.mulf %55, %59 : vector<16x16xf32>
    %61 = arith.truncf %60 : vector<16x16xf32> to vector<16x16xbf16>
    %cst_21 = arith.constant dense<0.000000e+00> : vector<16x32xf32>
    %62 = tpu.matmul %61, %49, %cst_21 {dimension_numbers = #tpu.dot_dimension_numbers<[1], [0], [0], [1], [0, 0, 1, 1], [], []>} : vector<16x16xbf16>, vector<16x32xbf16>, vector<16x32xf32> -> vector<16x32xf32>
    %63 = vector.extract_strided_slice %19 {offsets = [0, 0, 64], sizes = [1, 16, 32], strides = [1, 1, 1]} : vector<2x16x128xbf16> to vector<1x16x32xbf16>
    %64 = vector.shape_cast %63 : vector<1x16x32xbf16> to vector<16x32xbf16>
    %65 = vector.extract_strided_slice %22 {offsets = [0, 0, 64], sizes = [1, 16, 32], strides = [1, 1, 1]} : vector<2x16x128xbf16> to vector<1x16x32xbf16>
    %66 = vector.shape_cast %65 : vector<1x16x32xbf16> to vector<16x32xbf16>
    %67 = vector.extract_strided_slice %24 {offsets = [0, 0, 64], sizes = [1, 16, 32], strides = [1, 1, 1]} : vector<2x16x128xbf16> to vector<1x16x32xbf16>
    %68 = vector.shape_cast %67 : vector<1x16x32xbf16> to vector<16x32xbf16>
    %cst_22 = arith.constant dense<0.000000e+00> : vector<16x16xf32>
    %69 = tpu.matmul %64, %66, %cst_22 {dimension_numbers = #tpu.dot_dimension_numbers<[1], [1], [0], [0], [0, 0, 1, 0], [], []>} : vector<16x32xbf16>, vector<16x32xbf16>, vector<16x16xf32> -> vector<16x16xf32>
    %cst_23 = arith.constant dense<0xFF800000> : vector<16xf32>
    %70 = vector.multi_reduction <maximumf>, %69, %cst_23 [1] : vector<16x16xf32> to vector<16xf32>
    %71 = vector.shape_cast %70 : vector<16xf32> to vector<16x1xf32>
    %72 = vector.broadcast %71 : vector<16x1xf32> to vector<16x16xf32>
    %73 = arith.subf %69, %72 : vector<16x16xf32>
    %74 = math.exp %73 : vector<16x16xf32>
    %cst_24 = arith.constant dense<0.000000e+00> : vector<16xf32>
    %75 = vector.multi_reduction <add>, %74, %cst_24 [1] : vector<16x16xf32> to vector<16xf32>
    %76 = vector.shape_cast %75 : vector<16xf32> to vector<16x1xf32>
    %77 = tpu.reciprocal %76 {approx = true} : vector<16x1xf32> -> vector<16x1xf32>
    %78 = vector.broadcast %77 : vector<16x1xf32> to vector<16x16xf32>
    %79 = arith.mulf %74, %78 : vector<16x16xf32>
    %80 = arith.truncf %79 : vector<16x16xf32> to vector<16x16xbf16>
    %cst_25 = arith.constant dense<0.000000e+00> : vector<16x32xf32>
    %81 = tpu.matmul %80, %68, %cst_25 {dimension_numbers = #tpu.dot_dimension_numbers<[1], [0], [0], [1], [0, 0, 1, 1], [], []>} : vector<16x16xbf16>, vector<16x32xbf16>, vector<16x32xf32> -> vector<16x32xf32>
    %82 = vector.extract_strided_slice %19 {offsets = [0, 0, 96], sizes = [1, 16, 32], strides = [1, 1, 1]} : vector<2x16x128xbf16> to vector<1x16x32xbf16>
    %83 = vector.shape_cast %82 : vector<1x16x32xbf16> to vector<16x32xbf16>
    %84 = vector.extract_strided_slice %22 {offsets = [0, 0, 96], sizes = [1, 16, 32], strides = [1, 1, 1]} : vector<2x16x128xbf16> to vector<1x16x32xbf16>
    %85 = vector.shape_cast %84 : vector<1x16x32xbf16> to vector<16x32xbf16>
    %86 = vector.extract_strided_slice %24 {offsets = [0, 0, 96], sizes = [1, 16, 32], strides = [1, 1, 1]} : vector<2x16x128xbf16> to vector<1x16x32xbf16>
    %87 = vector.shape_cast %86 : vector<1x16x32xbf16> to vector<16x32xbf16>
    %cst_26 = arith.constant dense<0.000000e+00> : vector<16x16xf32>
    %88 = tpu.matmul %83, %85, %cst_26 {dimension_numbers = #tpu.dot_dimension_numbers<[1], [1], [0], [0], [0, 0, 1, 0], [], []>} : vector<16x32xbf16>, vector<16x32xbf16>, vector<16x16xf32> -> vector<16x16xf32>
    %cst_27 = arith.constant dense<0xFF800000> : vector<16xf32>
    %89 = vector.multi_reduction <maximumf>, %88, %cst_27 [1] : vector<16x16xf32> to vector<16xf32>
    %90 = vector.shape_cast %89 : vector<16xf32> to vector<16x1xf32>
    %91 = vector.broadcast %90 : vector<16x1xf32> to vector<16x16xf32>
    %92 = arith.subf %88, %91 : vector<16x16xf32>
    %93 = math.exp %92 : vector<16x16xf32>
    %cst_28 = arith.constant dense<0.000000e+00> : vector<16xf32>
    %94 = vector.multi_reduction <add>, %93, %cst_28 [1] : vector<16x16xf32> to vector<16xf32>
    %95 = vector.shape_cast %94 : vector<16xf32> to vector<16x1xf32>
    %96 = tpu.reciprocal %95 {approx = true} : vector<16x1xf32> -> vector<16x1xf32>
    %97 = vector.broadcast %96 : vector<16x1xf32> to vector<16x16xf32>
    %98 = arith.mulf %93, %97 : vector<16x16xf32>
    %99 = arith.truncf %98 : vector<16x16xf32> to vector<16x16xbf16>
    %cst_29 = arith.constant dense<0.000000e+00> : vector<16x32xf32>
    %100 = tpu.matmul %99, %87, %cst_29 {dimension_numbers = #tpu.dot_dimension_numbers<[1], [0], [0], [1], [0, 0, 1, 1], [], []>} : vector<16x16xbf16>, vector<16x32xbf16>, vector<16x32xf32> -> vector<16x32xf32>
    %101 = tpu.concatenate %43, %62, %81, %100 in 1 : vector<16x32xf32>, vector<16x32xf32>, vector<16x32xf32>, vector<16x32xf32> -> vector<16x128xf32>
    %102 = vector.extract_strided_slice %19 {offsets = [1, 0, 0], sizes = [1, 16, 32], strides = [1, 1, 1]} : vector<2x16x128xbf16> to vector<1x16x32xbf16>
    %103 = vector.shape_cast %102 : vector<1x16x32xbf16> to vector<16x32xbf16>
    %104 = vector.extract_strided_slice %22 {offsets = [1, 0, 0], sizes = [1, 16, 32], strides = [1, 1, 1]} : vector<2x16x128xbf16> to vector<1x16x32xbf16>
    %105 = vector.shape_cast %104 : vector<1x16x32xbf16> to vector<16x32xbf16>
    %106 = vector.extract_strided_slice %24 {offsets = [1, 0, 0], sizes = [1, 16, 32], strides = [1, 1, 1]} : vector<2x16x128xbf16> to vector<1x16x32xbf16>
    %107 = vector.shape_cast %106 : vector<1x16x32xbf16> to vector<16x32xbf16>
    %cst_30 = arith.constant dense<0.000000e+00> : vector<16x16xf32>
    %108 = tpu.matmul %103, %105, %cst_30 {dimension_numbers = #tpu.dot_dimension_numbers<[1], [1], [0], [0], [0, 0, 1, 0], [], []>} : vector<16x32xbf16>, vector<16x32xbf16>, vector<16x16xf32> -> vector<16x16xf32>
    %cst_31 = arith.constant dense<0xFF800000> : vector<16xf32>
    %109 = vector.multi_reduction <maximumf>, %108, %cst_31 [1] : vector<16x16xf32> to vector<16xf32>
    %110 = vector.shape_cast %109 : vector<16xf32> to vector<16x1xf32>
    %111 = vector.broadcast %110 : vector<16x1xf32> to vector<16x16xf32>
    %112 = arith.subf %108, %111 : vector<16x16xf32>
    %113 = math.exp %112 : vector<16x16xf32>
    %cst_32 = arith.constant dense<0.000000e+00> : vector<16xf32>
    %114 = vector.multi_reduction <add>, %113, %cst_32 [1] : vector<16x16xf32> to vector<16xf32>
    %115 = vector.shape_cast %114 : vector<16xf32> to vector<16x1xf32>
    %116 = tpu.reciprocal %115 {approx = true} : vector<16x1xf32> -> vector<16x1xf32>
    %117 = vector.broadcast %116 : vector<16x1xf32> to vector<16x16xf32>
    %118 = arith.mulf %113, %117 : vector<16x16xf32>
    %119 = arith.truncf %118 : vector<16x16xf32> to vector<16x16xbf16>
    %cst_33 = arith.constant dense<0.000000e+00> : vector<16x32xf32>
    %120 = tpu.matmul %119, %107, %cst_33 {dimension_numbers = #tpu.dot_dimension_numbers<[1], [0], [0], [1], [0, 0, 1, 1], [], []>} : vector<16x16xbf16>, vector<16x32xbf16>, vector<16x32xf32> -> vector<16x32xf32>
    %121 = vector.extract_strided_slice %19 {offsets = [1, 0, 32], sizes = [1, 16, 32], strides = [1, 1, 1]} : vector<2x16x128xbf16> to vector<1x16x32xbf16>
    %122 = vector.shape_cast %121 : vector<1x16x32xbf16> to vector<16x32xbf16>
    %123 = vector.extract_strided_slice %22 {offsets = [1, 0, 32], sizes = [1, 16, 32], strides = [1, 1, 1]} : vector<2x16x128xbf16> to vector<1x16x32xbf16>
    %124 = vector.shape_cast %123 : vector<1x16x32xbf16> to vector<16x32xbf16>
    %125 = vector.extract_strided_slice %24 {offsets = [1, 0, 32], sizes = [1, 16, 32], strides = [1, 1, 1]} : vector<2x16x128xbf16> to vector<1x16x32xbf16>
    %126 = vector.shape_cast %125 : vector<1x16x32xbf16> to vector<16x32xbf16>
    %cst_34 = arith.constant dense<0.000000e+00> : vector<16x16xf32>
    %127 = tpu.matmul %122, %124, %cst_34 {dimension_numbers = #tpu.dot_dimension_numbers<[1], [1], [0], [0], [0, 0, 1, 0], [], []>} : vector<16x32xbf16>, vector<16x32xbf16>, vector<16x16xf32> -> vector<16x16xf32>
    %cst_35 = arith.constant dense<0xFF800000> : vector<16xf32>
    %128 = vector.multi_reduction <maximumf>, %127, %cst_35 [1] : vector<16x16xf32> to vector<16xf32>
    %129 = vector.shape_cast %128 : vector<16xf32> to vector<16x1xf32>
    %130 = vector.broadcast %129 : vector<16x1xf32> to vector<16x16xf32>
    %131 = arith.subf %127, %130 : vector<16x16xf32>
    %132 = math.exp %131 : vector<16x16xf32>
    %cst_36 = arith.constant dense<0.000000e+00> : vector<16xf32>
    %133 = vector.multi_reduction <add>, %132, %cst_36 [1] : vector<16x16xf32> to vector<16xf32>
    %134 = vector.shape_cast %133 : vector<16xf32> to vector<16x1xf32>
    %135 = tpu.reciprocal %134 {approx = true} : vector<16x1xf32> -> vector<16x1xf32>
    %136 = vector.broadcast %135 : vector<16x1xf32> to vector<16x16xf32>
    %137 = arith.mulf %132, %136 : vector<16x16xf32>
    %138 = arith.truncf %137 : vector<16x16xf32> to vector<16x16xbf16>
    %cst_37 = arith.constant dense<0.000000e+00> : vector<16x32xf32>
    %139 = tpu.matmul %138, %126, %cst_37 {dimension_numbers = #tpu.dot_dimension_numbers<[1], [0], [0], [1], [0, 0, 1, 1], [], []>} : vector<16x16xbf16>, vector<16x32xbf16>, vector<16x32xf32> -> vector<16x32xf32>
    %140 = vector.extract_strided_slice %19 {offsets = [1, 0, 64], sizes = [1, 16, 32], strides = [1, 1, 1]} : vector<2x16x128xbf16> to vector<1x16x32xbf16>
    %141 = vector.shape_cast %140 : vector<1x16x32xbf16> to vector<16x32xbf16>
    %142 = vector.extract_strided_slice %22 {offsets = [1, 0, 64], sizes = [1, 16, 32], strides = [1, 1, 1]} : vector<2x16x128xbf16> to vector<1x16x32xbf16>
    %143 = vector.shape_cast %142 : vector<1x16x32xbf16> to vector<16x32xbf16>
    %144 = vector.extract_strided_slice %24 {offsets = [1, 0, 64], sizes = [1, 16, 32], strides = [1, 1, 1]} : vector<2x16x128xbf16> to vector<1x16x32xbf16>
    %145 = vector.shape_cast %144 : vector<1x16x32xbf16> to vector<16x32xbf16>
    %cst_38 = arith.constant dense<0.000000e+00> : vector<16x16xf32>
    %146 = tpu.matmul %141, %143, %cst_38 {dimension_numbers = #tpu.dot_dimension_numbers<[1], [1], [0], [0], [0, 0, 1, 0], [], []>} : vector<16x32xbf16>, vector<16x32xbf16>, vector<16x16xf32> -> vector<16x16xf32>
    %cst_39 = arith.constant dense<0xFF800000> : vector<16xf32>
    %147 = vector.multi_reduction <maximumf>, %146, %cst_39 [1] : vector<16x16xf32> to vector<16xf32>
    %148 = vector.shape_cast %147 : vector<16xf32> to vector<16x1xf32>
    %149 = vector.broadcast %148 : vector<16x1xf32> to vector<16x16xf32>
    %150 = arith.subf %146, %149 : vector<16x16xf32>
    %151 = math.exp %150 : vector<16x16xf32>
    %cst_40 = arith.constant dense<0.000000e+00> : vector<16xf32>
    %152 = vector.multi_reduction <add>, %151, %cst_40 [1] : vector<16x16xf32> to vector<16xf32>
    %153 = vector.shape_cast %152 : vector<16xf32> to vector<16x1xf32>
    %154 = tpu.reciprocal %153 {approx = true} : vector<16x1xf32> -> vector<16x1xf32>
    %155 = vector.broadcast %154 : vector<16x1xf32> to vector<16x16xf32>
    %156 = arith.mulf %151, %155 : vector<16x16xf32>
    %157 = arith.truncf %156 : vector<16x16xf32> to vector<16x16xbf16>
    %cst_41 = arith.constant dense<0.000000e+00> : vector<16x32xf32>
    %158 = tpu.matmul %157, %145, %cst_41 {dimension_numbers = #tpu.dot_dimension_numbers<[1], [0], [0], [1], [0, 0, 1, 1], [], []>} : vector<16x16xbf16>, vector<16x32xbf16>, vector<16x32xf32> -> vector<16x32xf32>
    %159 = vector.extract_strided_slice %19 {offsets = [1, 0, 96], sizes = [1, 16, 32], strides = [1, 1, 1]} : vector<2x16x128xbf16> to vector<1x16x32xbf16>
    %160 = vector.shape_cast %159 : vector<1x16x32xbf16> to vector<16x32xbf16>
    %161 = vector.extract_strided_slice %22 {offsets = [1, 0, 96], sizes = [1, 16, 32], strides = [1, 1, 1]} : vector<2x16x128xbf16> to vector<1x16x32xbf16>
    %162 = vector.shape_cast %161 : vector<1x16x32xbf16> to vector<16x32xbf16>
    %163 = vector.extract_strided_slice %24 {offsets = [1, 0, 96], sizes = [1, 16, 32], strides = [1, 1, 1]} : vector<2x16x128xbf16> to vector<1x16x32xbf16>
    %164 = vector.shape_cast %163 : vector<1x16x32xbf16> to vector<16x32xbf16>
    %cst_42 = arith.constant dense<0.000000e+00> : vector<16x16xf32>
    %165 = tpu.matmul %160, %162, %cst_42 {dimension_numbers = #tpu.dot_dimension_numbers<[1], [1], [0], [0], [0, 0, 1, 0], [], []>} : vector<16x32xbf16>, vector<16x32xbf16>, vector<16x16xf32> -> vector<16x16xf32>
    %cst_43 = arith.constant dense<0xFF800000> : vector<16xf32>
    %166 = vector.multi_reduction <maximumf>, %165, %cst_43 [1] : vector<16x16xf32> to vector<16xf32>
    %167 = vector.shape_cast %166 : vector<16xf32> to vector<16x1xf32>
    %168 = vector.broadcast %167 : vector<16x1xf32> to vector<16x16xf32>
    %169 = arith.subf %165, %168 : vector<16x16xf32>
    %170 = math.exp %169 : vector<16x16xf32>
    %cst_44 = arith.constant dense<0.000000e+00> : vector<16xf32>
    %171 = vector.multi_reduction <add>, %170, %cst_44 [1] : vector<16x16xf32> to vector<16xf32>
    %172 = vector.shape_cast %171 : vector<16xf32> to vector<16x1xf32>
    %173 = tpu.reciprocal %172 {approx = true} : vector<16x1xf32> -> vector<16x1xf32>
    %174 = vector.broadcast %173 : vector<16x1xf32> to vector<16x16xf32>
    %175 = arith.mulf %170, %174 : vector<16x16xf32>
    %176 = arith.truncf %175 : vector<16x16xf32> to vector<16x16xbf16>
    %cst_45 = arith.constant dense<0.000000e+00> : vector<16x32xf32>
    %177 = tpu.matmul %176, %164, %cst_45 {dimension_numbers = #tpu.dot_dimension_numbers<[1], [0], [0], [1], [0, 0, 1, 1], [], []>} : vector<16x16xbf16>, vector<16x32xbf16>, vector<16x32xf32> -> vector<16x32xf32>
    %178 = tpu.concatenate %120, %139, %158, %177 in 1 : vector<16x32xf32>, vector<16x32xf32>, vector<16x32xf32>, vector<16x32xf32> -> vector<16x128xf32>
    %179 = tpu.concatenate %101, %178 in 0 : vector<16x128xf32>, vector<16x128xf32> -> vector<32x128xf32>
    %180 = arith.truncf %179 : vector<32x128xf32> to vector<32x128xbf16>
    %c0_46 = arith.constant 0 : index
    %c0_47 = arith.constant 0 : index
    %181 = vector.load %arg7[%c0_46, %c0_47] : memref<128x128xbf16, #tpu.memory_space<vmem>>, vector<128x128xbf16>
    %cst_48 = arith.constant dense<0.000000e+00> : vector<32x128xf32>
    %182 = tpu.matmul %180, %181, %cst_48 {dimension_numbers = #tpu.dot_dimension_numbers<[1], [0], [0], [1], [0, 0, 1, 1], [], []>} : vector<32x128xbf16>, vector<128x128xbf16>, vector<32x128xf32> -> vector<32x128xf32>
    %c0_49 = arith.constant 0 : index
    %c0_50 = arith.constant 0 : index
    %183 = vector.load %arg8[%c0_49, %c0_50] : memref<1x128xf32, #tpu.memory_space<vmem>>, vector<1x128xf32>
    %184 = vector.broadcast %183 : vector<1x128xf32> to vector<32x128xf32>
    %185 = arith.addf %182, %184 : vector<32x128xf32>
    %186 = arith.addf %1, %185 : vector<32x128xf32>
    %c0_51 = arith.constant 0 : index
    %c0_52 = arith.constant 0 : index
    %187 = vector.load %arg9[%c0_51, %c0_52] : memref<1x128xf32, #tpu.memory_space<vmem>>, vector<1x128xf32>
    %c0_53 = arith.constant 0 : index
    %c0_54 = arith.constant 0 : index
    %188 = vector.load %arg10[%c0_53, %c0_54] : memref<1x128xf32, #tpu.memory_space<vmem>>, vector<1x128xf32>
    %cst_55 = arith.constant dense<0.000000e+00> : vector<32xf32>
    %189 = vector.multi_reduction <add>, %186, %cst_55 [1] : vector<32x128xf32> to vector<32xf32>
    %190 = vector.shape_cast %189 : vector<32xf32> to vector<32x1xf32>
    %cst_56 = arith.constant 1.280000e+02 : f32
    %191 = vector.broadcast %cst_56 : f32 to vector<32x1xf32>
    %192 = arith.divf %190, %191 : vector<32x1xf32>
    %193 = vector.broadcast %192 : vector<32x1xf32> to vector<32x128xf32>
    %194 = arith.subf %186, %193 : vector<32x128xf32>
    %195 = arith.mulf %194, %194 : vector<32x128xf32>
    %cst_57 = arith.constant dense<0.000000e+00> : vector<32xf32>
    %196 = vector.multi_reduction <add>, %195, %cst_57 [1] : vector<32x128xf32> to vector<32xf32>
    %197 = vector.shape_cast %196 : vector<32xf32> to vector<32x1xf32>
    %cst_58 = arith.constant 1.280000e+02 : f32
    %198 = vector.broadcast %cst_58 : f32 to vector<32x1xf32>
    %199 = arith.divf %197, %198 : vector<32x1xf32>
    %cst_59 = arith.constant 9.99999974E-6 : f32
    %200 = vector.broadcast %cst_59 : f32 to vector<32x1xf32>
    %201 = arith.addf %199, %200 : vector<32x1xf32>
    %202 = math.rsqrt %201 : vector<32x1xf32>
    %203 = vector.broadcast %202 : vector<32x1xf32> to vector<32x128xf32>
    %204 = arith.mulf %194, %203 : vector<32x128xf32>
    %205 = vector.broadcast %187 : vector<1x128xf32> to vector<32x128xf32>
    %206 = arith.mulf %204, %205 : vector<32x128xf32>
    %207 = vector.broadcast %188 : vector<1x128xf32> to vector<32x128xf32>
    %208 = arith.addf %206, %207 : vector<32x128xf32>
    %209 = arith.truncf %208 : vector<32x128xf32> to vector<32x128xbf16>
    %c0_60 = arith.constant 0 : index
    %c0_61 = arith.constant 0 : index
    %210 = vector.load %arg11[%c0_60, %c0_61] : memref<128x256xbf16, #tpu.memory_space<vmem>>, vector<128x256xbf16>
    %cst_62 = arith.constant dense<0.000000e+00> : vector<32x256xf32>
    %211 = tpu.matmul %209, %210, %cst_62 {dimension_numbers = #tpu.dot_dimension_numbers<[1], [0], [0], [1], [0, 0, 1, 1], [], []>} : vector<32x128xbf16>, vector<128x256xbf16>, vector<32x256xf32> -> vector<32x256xf32>
    %c0_63 = arith.constant 0 : index
    %c0_64 = arith.constant 0 : index
    %212 = vector.load %arg12[%c0_63, %c0_64] : memref<1x256xf32, #tpu.memory_space<vmem>>, vector<1x256xf32>
    %213 = vector.broadcast %212 : vector<1x256xf32> to vector<32x256xf32>
    %214 = arith.addf %211, %213 : vector<32x256xf32>
    %cst_65 = arith.constant 0.000000e+00 : f32
    %215 = vector.broadcast %cst_65 : f32 to vector<32x256xf32>
    %216 = arith.maximumf %214, %215 : vector<32x256xf32>
    %217 = arith.truncf %216 : vector<32x256xf32> to vector<32x256xbf16>
    %c0_66 = arith.constant 0 : index
    %c0_67 = arith.constant 0 : index
    %218 = vector.load %arg13[%c0_66, %c0_67] : memref<256x128xbf16, #tpu.memory_space<vmem>>, vector<256x128xbf16>
    %cst_68 = arith.constant dense<0.000000e+00> : vector<32x128xf32>
    %219 = tpu.matmul %217, %218, %cst_68 {dimension_numbers = #tpu.dot_dimension_numbers<[1], [0], [0], [1], [0, 0, 1, 1], [], []>} : vector<32x256xbf16>, vector<256x128xbf16>, vector<32x128xf32> -> vector<32x128xf32>
    %c0_69 = arith.constant 0 : index
    %c0_70 = arith.constant 0 : index
    %220 = vector.load %arg14[%c0_69, %c0_70] : memref<1x128xf32, #tpu.memory_space<vmem>>, vector<1x128xf32>
    %221 = vector.broadcast %220 : vector<1x128xf32> to vector<32x128xf32>
    %222 = arith.addf %219, %221 : vector<32x128xf32>
    %223 = arith.addf %208, %222 : vector<32x128xf32>
    %c0_71 = arith.constant 0 : index
    %c0_72 = arith.constant 0 : index
    %224 = vector.load %arg15[%c0_71, %c0_72] : memref<1x128xf32, #tpu.memory_space<vmem>>, vector<1x128xf32>
    %c0_73 = arith.constant 0 : index
    %c0_74 = arith.constant 0 : index
    %225 = vector.load %arg16[%c0_73, %c0_74] : memref<1x128xf32, #tpu.memory_space<vmem>>, vector<1x128xf32>
    %cst_75 = arith.constant dense<0.000000e+00> : vector<32xf32>
    %226 = vector.multi_reduction <add>, %223, %cst_75 [1] : vector<32x128xf32> to vector<32xf32>
    %227 = vector.shape_cast %226 : vector<32xf32> to vector<32x1xf32>
    %cst_76 = arith.constant 1.280000e+02 : f32
    %228 = vector.broadcast %cst_76 : f32 to vector<32x1xf32>
    %229 = arith.divf %227, %228 : vector<32x1xf32>
    %230 = vector.broadcast %229 : vector<32x1xf32> to vector<32x128xf32>
    %231 = arith.subf %223, %230 : vector<32x128xf32>
    %232 = arith.mulf %231, %231 : vector<32x128xf32>
    %cst_77 = arith.constant dense<0.000000e+00> : vector<32xf32>
    %233 = vector.multi_reduction <add>, %232, %cst_77 [1] : vector<32x128xf32> to vector<32xf32>
    %234 = vector.shape_cast %233 : vector<32xf32> to vector<32x1xf32>
    %cst_78 = arith.constant 1.280000e+02 : f32
    %235 = vector.broadcast %cst_78 : f32 to vector<32x1xf32>
    %236 = arith.divf %234, %235 : vector<32x1xf32>
    %cst_79 = arith.constant 9.99999974E-6 : f32
    %237 = vector.broadcast %cst_79 : f32 to vector<32x1xf32>
    %238 = arith.addf %236, %237 : vector<32x1xf32>
    %239 = math.rsqrt %238 : vector<32x1xf32>
    %240 = vector.broadcast %239 : vector<32x1xf32> to vector<32x128xf32>
    %241 = arith.mulf %231, %240 : vector<32x128xf32>
    %242 = vector.broadcast %224 : vector<1x128xf32> to vector<32x128xf32>
    %243 = arith.mulf %241, %242 : vector<32x128xf32>
    %244 = vector.broadcast %225 : vector<1x128xf32> to vector<32x128xf32>
    %245 = arith.addf %243, %244 : vector<32x128xf32>
    %246 = vector.shape_cast %245 : vector<32x128xf32> to vector<2x16x128xf32>
    %c0_80 = arith.constant 0 : index
    %c0_81 = arith.constant 0 : index
    %c0_82 = arith.constant 0 : index
    %247 = vector.load %arg17[%c0_80, %c0_81, %c0_82] : memref<2x16x128xf32, #tpu.memory_space<vmem>>, vector<2x16x128xf32>
    tpu.vector_store %arg17[%c0_80, %c0_81, %c0_82], %246 {strides = array<i32>} : memref<2x16x128xf32, #tpu.memory_space<vmem>>, vector<2x16x128xf32>,
    return
  }
  func.func @transform_0(%arg0: i32) -> (i32, i32, i32) {
    %c0_i32 = arith.constant 0 : i32
    %c0_i32_0 = arith.constant 0 : i32
    %c0_i32_1 = arith.constant 0 : i32
    return %arg0, %c0_i32, %c0_i32_0 : i32, i32, i32
  }
  func.func @transform_1(%arg0: i32) -> (i32, i32, i32) {
    %c0_i32 = arith.constant 0 : i32
    %c0_i32_0 = arith.constant 0 : i32
    %c0_i32_1 = arith.constant 0 : i32
    return %arg0, %c0_i32, %c0_i32_0 : i32, i32, i32
  }
  func.func @transform_2(%arg0: i32) -> (i32, i32) {
    %c0_i32 = arith.constant 0 : i32
    %c0_i32_0 = arith.constant 0 : i32
    %c0_i32_1 = arith.constant 0 : i32
    return %c0_i32, %c0_i32_0 : i32, i32
  }
  func.func @transform_3(%arg0: i32) -> (i32, i32) {
    %c0_i32 = arith.constant 0 : i32
    %c0_i32_0 = arith.constant 0 : i32
    %c0_i32_1 = arith.constant 0 : i32
    return %c0_i32, %c0_i32_0 : i32, i32
  }
  func.func @transform_4(%arg0: i32) -> (i32, i32) {
    %c0_i32 = arith.constant 0 : i32
    %c0_i32_0 = arith.constant 0 : i32
    %c0_i32_1 = arith.constant 0 : i32
    return %c0_i32, %c0_i32_0 : i32, i32
  }
  func.func @transform_5(%arg0: i32) -> (i32, i32) {
    %c0_i32 = arith.constant 0 : i32
    %c0_i32_0 = arith.constant 0 : i32
    %c0_i32_1 = arith.constant 0 : i32
    return %c0_i32, %c0_i32_0 : i32, i32
  }
  func.func @transform_6(%arg0: i32) -> (i32, i32) {
    %c0_i32 = arith.constant 0 : i32
    %c0_i32_0 = arith.constant 0 : i32
    %c0_i32_1 = arith.constant 0 : i32
    return %c0_i32, %c0_i32_0 : i32, i32
  }
  func.func @transform_7(%arg0: i32) -> (i32, i32) {
    %c0_i32 = arith.constant 0 : i32
    %c0_i32_0 = arith.constant 0 : i32
    %c0_i32_1 = arith.constant 0 : i32
    return %c0_i32, %c0_i32_0 : i32, i32
  }
  func.func @transform_8(%arg0: i32) -> (i32, i32) {
    %c0_i32 = arith.constant 0 : i32
    %c0_i32_0 = arith.constant 0 : i32
    %c0_i32_1 = arith.constant 0 : i32
    return %c0_i32, %c0_i32_0 : i32, i32
  }
  func.func @transform_9(%arg0: i32) -> (i32, i32) {
    %c0_i32 = arith.constant 0 : i32
    %c0_i32_0 = arith.constant 0 : i32
    %c0_i32_1 = arith.constant 0 : i32
    return %c0_i32, %c0_i32_0 : i32, i32
  }
  func.func @transform_10(%arg0: i32) -> (i32, i32) {
    %c0_i32 = arith.constant 0 : i32
    %c0_i32_0 = arith.constant 0 : i32
    %c0_i32_1 = arith.constant 0 : i32
    return %c0_i32, %c0_i32_0 : i32, i32
  }
  func.func @transform_11(%arg0: i32) -> (i32, i32) {
    %c0_i32 = arith.constant 0 : i32
    %c0_i32_0 = arith.constant 0 : i32
    %c0_i32_1 = arith.constant 0 : i32
    return %c0_i32, %c0_i32_0 : i32, i32
  }
  func.func @transform_12(%arg0: i32) -> (i32, i32) {
    %c0_i32 = arith.constant 0 : i32
    %c0_i32_0 = arith.constant 0 : i32
    %c0_i32_1 = arith.constant 0 : i32
    return %c0_i32, %c0_i32_0 : i32, i32
  }
  func.func @transform_13(%arg0: i32) -> (i32, i32) {
    %c0_i32 = arith.constant 0 : i32
    %c0_i32_0 = arith.constant 0 : i32
    %c0_i32_1 = arith.constant 0 : i32
    return %c0_i32, %c0_i32_0 : i32, i32
  }
  func.func @transform_14(%arg0: i32) -> (i32, i32) {
    %c0_i32 = arith.constant 0 : i32
    %c0_i32_0 = arith.constant 0 : i32
    %c0_i32_1 = arith.constant 0 : i32
    return %c0_i32, %c0_i32_0 : i32, i32
  }
  func.func @transform_15(%arg0: i32) -> (i32, i32) {
    %c0_i32 = arith.constant 0 : i32
    %c0_i32_0 = arith.constant 0 : i32
    %c0_i32_1 = arith.constant 0 : i32
    return %c0_i32, %c0_i32_0 : i32, i32
  }
  func.func @transform_16(%arg0: i32) -> (i32, i32, i32) {
    %c0_i32 = arith.constant 0 : i32
    %c0_i32_0 = arith.constant 0 : i32
    %c0_i32_1 = arith.constant 0 : i32
    return %arg0, %c0_i32, %c0_i32_0 : i32, i32, i32
  }
}

</mosaic_0001>

<bundles_post_ra>
// kernel: transformer_encoder_layer.1
= control target key start
LH: loop header
LB: loop body
LE: loop exit
PB: predicated region body
PF: predicated region fallthrough
CT: control target
= control target key end

     0   :  { %s3678_s0 = inlined_call_operand.vmem [shape: f32[2,16,128], index: 0, kind: input, shape index: {}]   ;;  %s3679_s1 = inlined_call_operand.vmem [shape: f32[2,16,128], index: 1, kind: input, shape index: {}]   ;;  %s3680_s2 = inlined_call_operand.vmem [shape: bf16[128,256], index: 2, kind: input, shape index: {}]   ;;  %s3681_s3 = inlined_call_operand.hbm [shape: f32[1,256], index: 3, kind: input, shape index: {}]   ;;  %s3682_s4 = inlined_call_operand.vmem [shape: bf16[128,128], index: 4, kind: input, shape index: {}]   ;;  %s3683_s5 = inlined_call_operand.hbm [shape: f32[1,128], index: 5, kind: input, shape index: {}]   ;;  %s3684_s6 = inlined_call_operand.hbm [shape: bf16[128,128], index: 6, kind: input, shape index: {}]   ;;  %s3685_s7 = inlined_call_operand.hbm [shape: f32[1,128], index: 7, kind: input, shape index: {}]   ;;  %s3686_s8 = inlined_call_operand.hbm [shape: f32[1,128], index: 8, kind: input, shape index: {}]   ;;  %s3687_s9 = inlined_call_operand.hbm [shape: f32[1,128], index: 9, kind: input, shape index: {}]   ;;  %s3688_s10 = inlined_call_operand.hbm [shape: bf16[128,256], index: 10, kind: input, shape index: {}]   ;;  %s3689_s11 = inlined_call_operand.hbm [shape: f32[1,256], index: 11, kind: input, shape index: {}]   ;;  %s3690_s12 = inlined_call_operand.hbm [shape: bf16[256,128], index: 12, kind: input, shape index: {}]   ;;  %s3691_s13 = inlined_call_operand.hbm [shape: f32[1,128], index: 13, kind: input, shape index: {}]   ;;  %s3692_s14 = inlined_call_operand.hbm [shape: f32[1,128], index: 14, kind: input, shape index: {}]   ;;  %s3693_s15 = inlined_call_operand.hbm [shape: f32[1,128], index: 15, kind: input, shape index: {}]   ;;  %s3694_s16 = inlined_call_operand.vmem [shape: f32[2,16,128], index: 16, kind: output, shape index: {}]  }
   0x1   :  { %3696 = sst [smem:[#allocation28_spill]] %s3678_s0 }
   0x2   :  { %21 = vsyncpa [#allocation3], 0 }
   0x3   :  { %22 = vsyncpa [#allocation5], 0 }
   0x4   :  { %23 = vsyncpa [#allocation8], 0 }
   0x5   :  { %24 = vsyncpa [#allocation11], 0 }
   0x6   :  { %25 = vsyncpa [#allocation14], 0 }
   0x7   :  { %26 = vsyncpa [#allocation17], 0 }
   0x8   :  { %27 = vsyncpa [#allocation20], 0  ;;  %s2959_s21 = smov [#allocation4]   ;;  %s2960_s23 = smov [#allocation7]  }
   0x9   :  { %s52_s22 = sshll.u32 %s2959_s21, 4  ;;  %s74_s24 = sshll.u32 %s2960_s23, 4  ;;  %s53_s22 = int_to_ptr.vmem [resolvable:$true] %s52_s22  ;;  %s75_s24 = int_to_ptr.vmem [resolvable:$true] %s74_s24 }
   0xa   :  { %s2681_s27 = scalar_lea.hbm %s3683_s5, 16 }
   0xb   :  { %p2682_p0 = scmp.ne.s32.totalorder %s3683_s5, %s2681_s27  ;;  %p2685_p1 = scmp.lt.u32.totalorder %s2681_s27, %s3683_s5 }
   0xd   :  { %p2687_p2 = pnand %p2685_p1, %p2682_p0 }
   0xf   :  { %2690 = shalt.err (!%p2687_p2)
}
  0x10   :  { %s2691_s17 = scalar_lea.vmem %s53_s22, 16  ;;  %s2695_s18 = scalar_lea.vmem %s53_s22, 32 }
  0x11   :  { %p2692_p3 = scmp.ne.s32.totalorder %s53_s22, %s2691_s17  ;;  %p2696_p4 = scmp.lt.s32.totalorder %s53_s22, %s53_s22 }
  0x12   :  { %p2697_p5 = scmp.lt.s32.totalorder %s2695_s18, %s2691_s17 }
  0x14   :  { %p2698_p6 = por %p2697_p5, %p2696_p4 }
  0x16   :  { %p2699_p7 = pnand %p2698_p6, %p2692_p3 }
  0x18   :  { %2702 = shalt.err (!%p2699_p7)
}
  0x19   :  { %55 = dma.hbm_to_vmem [thread:$0]  %s3683_s5, 16, %s53_s22, [#allocation5]  }
  0x1a   :  { %s2703_s25 = scalar_lea.hbm %s3685_s7, 16 }
  0x1b   :  { %p2704_p8 = scmp.ne.s32.totalorder %s3685_s7, %s2703_s25  ;;  %p2707_p9 = scmp.lt.u32.totalorder %s2703_s25, %s3685_s7 }
  0x1d   :  { %p2709_p10 = pnand %p2707_p9, %p2704_p8 }
  0x1f   :  { %2712 = shalt.err (!%p2709_p10)
}
  0x20   :  { %s2713_s30 = scalar_lea.vmem %s75_s24, 16  ;;  %s2717_s0 = scalar_lea.vmem %s75_s24, 32 }
  0x21   :  { %p2714_p11 = scmp.ne.s32.totalorder %s75_s24, %s2713_s30  ;;  %p2718_p12 = scmp.lt.s32.totalorder %s75_s24, %s75_s24 }
  0x22   :  { %p2719_p13 = scmp.lt.s32.totalorder %s2717_s0, %s2713_s30 }
  0x24   :  { %p2720_p0 = por %p2719_p13, %p2718_p12 }
  0x26   :  { %p2721_p1 = pnand %p2720_p0, %p2714_p11 }
  0x28   :  { %2724 = shalt.err (!%p2721_p1)
}
  0x29   :  { %77 = dma.hbm_to_vmem [thread:$0]  %s3685_s7, 16, %s75_s24, [#allocation8]  }
  0x2a   :  { %s2961_s17 = smov [#allocation10]   ;;  %s2962_s19 = smov [#allocation13]  }
  0x2b   :  { %s94_s18 = sshll.u32 %s2961_s17, 4  ;;  %s116_s20 = sshll.u32 %s2962_s19, 4  ;;  %s95_s18 = int_to_ptr.vmem [resolvable:$true] %s94_s18  ;;  %s117_s20 = int_to_ptr.vmem [resolvable:$true] %s116_s20 }
  0x2c   :  { %s2725_s25 = scalar_lea.hbm %s3687_s9, 16 }
  0x2d   :  { %p2726_p2 = scmp.ne.s32.totalorder %s3687_s9, %s2725_s25  ;;  %p2729_p3 = scmp.lt.u32.totalorder %s2725_s25, %s3687_s9 }
  0x2f   :  { %p2731_p4 = pnand %p2729_p3, %p2726_p2 }
  0x31   :  { %2734 = shalt.err (!%p2731_p4)
}
  0x32   :  { %s2735_s7 = scalar_lea.vmem %s95_s18, 16  ;;  %s2739_s24 = scalar_lea.vmem %s95_s18, 32 }
  0x33   :  { %p2736_p5 = scmp.ne.s32.totalorder %s95_s18, %s2735_s7  ;;  %p2740_p6 = scmp.lt.s32.totalorder %s95_s18, %s95_s18 }
  0x34   :  { %p2741_p7 = scmp.lt.s32.totalorder %s2739_s24, %s2735_s7 }
  0x36   :  { %p2742_p8 = por %p2741_p7, %p2740_p6 }
  0x38   :  { %p2743_p9 = pnand %p2742_p8, %p2736_p5 }
  0x3a   :  { %2746 = shalt.err (!%p2743_p9)
}
  0x3b   :  { %97 = dma.hbm_to_vmem [thread:$0]  %s3687_s9, 16, %s95_s18, [#allocation11]  }
  0x3c   :  { %s2747_s17 = scalar_lea.hbm %s3689_s11, 32 }
  0x3d   :  { %p2748_p10 = scmp.ne.s32.totalorder %s3689_s11, %s2747_s17  ;;  %p2751_p11 = scmp.lt.u32.totalorder %s2747_s17, %s3689_s11 }
  0x3f   :  { %p2753_p12 = pnand %p2751_p11, %p2748_p10 }
  0x41   :  { %2756 = shalt.err (!%p2753_p12)
}
  0x42   :  { %s2757_s26 = scalar_lea.vmem %s117_s20, 32  ;;  %p2762_p0 = scmp.lt.s32.totalorder %s117_s20, %s117_s20 }
  0x43   :  { %p2758_p13 = scmp.ne.s32.totalorder %s117_s20, %s2757_s26  ;;  %p2763_p1 = scmp.lt.s32.totalorder %s2757_s26, %s2757_s26 }
  0x45   :  { %p2764_p2 = por %p2763_p1, %p2762_p0 }
  0x47   :  { %p2765_p3 = pnand %p2764_p2, %p2758_p13 }
  0x49   :  { %2768 = shalt.err (!%p2765_p3)
}
  0x4a   :  { %119 = dma.hbm_to_vmem [thread:$0]  %s3689_s11, 32, %s117_s20, [#allocation14]  }
  0x4b   :  { %s2963_s27 = smov [#allocation16]   ;;  %s2964_s29 = smov [#allocation2]  }
  0x4c   :  { %s138_s28 = sshll.u32 %s2963_s27, 4  ;;  %s40_s7 = sshll.u32 %s2964_s29, 4  ;;  %s139_s28 = int_to_ptr.vmem [resolvable:$true] %s138_s28  ;;  %s41_s7 = int_to_ptr.vmem [resolvable:$true] %s40_s7 }
  0x4d   :  { %s2769_s0 = scalar_lea.hbm %s3691_s13, 16 }
  0x4e   :  { %p2770_p4 = scmp.ne.s32.totalorder %s3691_s13, %s2769_s0  ;;  %p2773_p5 = scmp.lt.u32.totalorder %s2769_s0, %s3691_s13 }
  0x50   :  { %p2775_p6 = pnand %p2773_p5, %p2770_p4 }
  0x52   :  { %2778 = shalt.err (!%p2775_p6)
}
  0x53   :  { %s2779_s11 = scalar_lea.vmem %s139_s28, 16  ;;  %s2783_s20 = scalar_lea.vmem %s139_s28, 32 }
  0x54   :  { %p2780_p7 = scmp.ne.s32.totalorder %s139_s28, %s2779_s11  ;;  %p2784_p8 = scmp.lt.s32.totalorder %s139_s28, %s139_s28 }
  0x55   :  { %p2785_p9 = scmp.lt.s32.totalorder %s2783_s20, %s2779_s11 }
  0x57   :  { %p2786_p10 = por %p2785_p9, %p2784_p8 }
  0x59   :  { %p2787_p11 = pnand %p2786_p10, %p2780_p7 }
  0x5b   :  { %2790 = shalt.err (!%p2787_p11)
}
  0x5c   :  { %141 = dma.hbm_to_vmem [thread:$0]  %s3691_s13, 16, %s139_s28, [#allocation17]  }
  0x5d   :  { %s2791_s9 = scalar_lea.hbm %s3681_s3, 32 }
  0x5e   :  { %p2792_p12 = scmp.ne.s32.totalorder %s3681_s3, %s2791_s9  ;;  %p2795_p13 = scmp.lt.u32.totalorder %s2791_s9, %s3681_s3 }
  0x60   :  { %p2797_p0 = pnand %p2795_p13, %p2792_p12 }
  0x62   :  { %2800 = shalt.err (!%p2797_p0)
}
  0x63   :  { %s2801_s30 = scalar_lea.vmem %s41_s7, 32  ;;  %p2806_p2 = scmp.lt.s32.totalorder %s41_s7, %s41_s7 }
  0x64   :  { %p2802_p1 = scmp.ne.s32.totalorder %s41_s7, %s2801_s30  ;;  %p2807_p3 = scmp.lt.s32.totalorder %s2801_s30, %s2801_s30 }
  0x66   :  { %p2808_p4 = por %p2807_p3, %p2806_p2 }
  0x68   :  { %p2809_p5 = pnand %p2808_p4, %p2802_p1 }
  0x6a   :  { %2812 = shalt.err (!%p2809_p5)
}
  0x6b   :  { %43 = dma.hbm_to_vmem [thread:$0]  %s3681_s3, 32, %s41_s7, [#allocation3]  }
  0x6c   :  { %s2965_s0 = smov [#allocation6]   ;;  %s2813_s19 = scalar_lea.hbm %s3684_s6, 1024 }
  0x6d   :  { %s61_s5 = sshll.u32 %s2965_s0, 4  ;;  %p2814_p6 = scmp.ne.s32.totalorder %s3684_s6, %s2813_s19  ;;  %s62_s5 = int_to_ptr.vmem [resolvable:$true] %s61_s5 }
  0x6e   :  { %p2817_p7 = scmp.lt.u32.totalorder %s2813_s19, %s3684_s6 }
  0x70   :  { %p2819_p8 = pnand %p2817_p7, %p2814_p6 }
  0x72   :  { %2822 = shalt.err (!%p2819_p8)
}
  0x73   :  { %s2823_s25 = scalar_lea.vmem %s62_s5, 1024  ;;  %p2828_p10 = scmp.lt.s32.totalorder %s62_s5, %s62_s5 }
  0x74   :  { %p2824_p9 = scmp.ne.s32.totalorder %s62_s5, %s2823_s25  ;;  %p2829_p11 = scmp.lt.s32.totalorder %s2823_s25, %s2823_s25 }
  0x76   :  { %p2830_p12 = por %p2829_p11, %p2828_p10 }
  0x78   :  { %p2831_p13 = pnand %p2830_p12, %p2824_p9 }
  0x7a   :  { %2834 = shalt.err (!%p2831_p13)
}
  0x7b   :  { %s2966_s3 = smov 64   ;;  %s2967_s7 = smov 4  }
  0x7c   :  { %67 = dma.hbm_to_vmem [thread:$0]  %s3684_s6, 1024, %s62_s5, [#allocation5], %s2966_s3, %s2966_s3, %s2967_s7  }
  0x7d   :  { %s2968_s18 = smov [#allocation9]   ;;  %s2969_s29 = smov [#allocation12]  }
  0x7e   :  { %s84_s27 = sshll.u32 %s2968_s18, 4  ;;  %s103_s24 = sshll.u32 %s2969_s29, 4  ;;  %s85_s27 = int_to_ptr.vmem [resolvable:$true] %s84_s27  ;;  %s104_s24 = int_to_ptr.vmem [resolvable:$true] %s103_s24 }
  0x7f   :  { %s2835_s28 = scalar_lea.hbm %s3686_s8, 16 }
  0x80   :  { %p2836_p0 = scmp.ne.s32.totalorder %s3686_s8, %s2835_s28  ;;  %p2839_p1 = scmp.lt.u32.totalorder %s2835_s28, %s3686_s8 }
  0x82   :  { %p2841_p2 = pnand %p2839_p1, %p2836_p0 }
  0x84   :  { %2844 = shalt.err (!%p2841_p2)
}
  0x85   :  { %s2845_s6 = scalar_lea.vmem %s85_s27, 16  ;;  %s2849_s5 = scalar_lea.vmem %s85_s27, 32 }
  0x86   :  { %p2846_p3 = scmp.ne.s32.totalorder %s85_s27, %s2845_s6  ;;  %p2850_p4 = scmp.lt.s32.totalorder %s85_s27, %s85_s27 }
  0x87   :  { %p2851_p5 = scmp.lt.s32.totalorder %s2849_s5, %s2845_s6 }
  0x89   :  { %p2852_p6 = por %p2851_p5, %p2850_p4 }
  0x8b   :  { %p2853_p7 = pnand %p2852_p6, %p2846_p3 }
  0x8d   :  { %2856 = shalt.err (!%p2853_p7)
}
  0x8e   :  { %87 = dma.hbm_to_vmem [thread:$0]  %s3686_s8, 16, %s85_s27, [#allocation8]  }
  0x8f   :  { %s2857_s25 = scalar_lea.hbm %s3688_s10, 2048 }
  0x90   :  { %p2858_p8 = scmp.ne.s32.totalorder %s3688_s10, %s2857_s25  ;;  %p2861_p9 = scmp.lt.u32.totalorder %s2857_s25, %s3688_s10 }
  0x92   :  { %p2863_p10 = pnand %p2861_p9, %p2858_p8 }
  0x94   :  { %2866 = shalt.err (!%p2863_p10)
}
  0x95   :  { %s2867_s30 = scalar_lea.vmem %s104_s24, 2048  ;;  %p2872_p12 = scmp.lt.s32.totalorder %s104_s24, %s104_s24 }
  0x96   :  { %p2868_p11 = scmp.ne.s32.totalorder %s104_s24, %s2867_s30  ;;  %p2873_p13 = scmp.lt.s32.totalorder %s2867_s30, %s2867_s30 }
  0x98   :  { %p2874_p0 = por %p2873_p13, %p2872_p12 }
  0x9a   :  { %p2875_p1 = pnand %p2874_p0, %p2868_p11 }
  0x9c   :  { %2878 = shalt.err (!%p2875_p1)
}
  0x9d   :  { %s2970_s8 = smov 128   ;;  %s2971_s27 = smov 8  }
  0x9e   :  { %109 = dma.hbm_to_vmem [thread:$0]  %s3688_s10, 2048, %s104_s24, [#allocation11], %s2970_s8, %s2970_s8, %s2971_s27  }
  0x9f   :  { %s2972_s0 = smov [#allocation15]   ;;  %s2973_s17 = smov [#allocation18]  }
  0xa0   :  { %s125_s22 = sshll.u32 %s2972_s0, 4  ;;  %s148_s19 = sshll.u32 %s2973_s17, 4  ;;  %s126_s22 = int_to_ptr.vmem [resolvable:$true] %s125_s22  ;;  %s149_s19 = int_to_ptr.vmem [resolvable:$true] %s148_s19 }
  0xa1   :  { %s2879_s11 = scalar_lea.hbm %s3690_s12, 2048 }
  0xa2   :  { %p2880_p2 = scmp.ne.s32.totalorder %s3690_s12, %s2879_s11  ;;  %p2883_p3 = scmp.lt.u32.totalorder %s2879_s11, %s3690_s12 }
  0xa4   :  { %p2885_p4 = pnand %p2883_p3, %p2880_p2 }
  0xa6   :  { %2888 = shalt.err (!%p2885_p4)
}
  0xa7   :  { %s2889_s10 = scalar_lea.vmem %s126_s22, 2048  ;;  %p2894_p6 = scmp.lt.s32.totalorder %s126_s22, %s126_s22 }
  0xa8   :  { %p2890_p5 = scmp.ne.s32.totalorder %s126_s22, %s2889_s10  ;;  %p2895_p7 = scmp.lt.s32.totalorder %s2889_s10, %s2889_s10 }
  0xaa   :  { %p2896_p8 = por %p2895_p7, %p2894_p6 }
  0xac   :  { %p2897_p9 = pnand %p2896_p8, %p2890_p5 }
  0xae   :  { %2900 = shalt.err (!%p2897_p9)
}
  0xaf   :  { %131 = dma.hbm_to_vmem [thread:$0]  %s3690_s12, 2048, %s126_s22, [#allocation14], %s2966_s3, %s2966_s3, %s2967_s7  }
  0xb0   :  { %s2901_s29 = scalar_lea.hbm %s3692_s14, 16 }
  0xb1   :  { %p2902_p10 = scmp.ne.s32.totalorder %s3692_s14, %s2901_s29  ;;  %p2905_p11 = scmp.lt.u32.totalorder %s2901_s29, %s3692_s14 }
  0xb3   :  { %p2907_p12 = pnand %p2905_p11, %p2902_p10 }
  0xb5   :  { %2910 = shalt.err (!%p2907_p12)
}
  0xb6   :  { %s2911_s28 = scalar_lea.vmem %s149_s19, 16  ;;  %s2915_s0 = scalar_lea.vmem %s149_s19, 32 }
  0xb7   :  { %p2912_p13 = scmp.ne.s32.totalorder %s149_s19, %s2911_s28  ;;  %p2916_p0 = scmp.lt.s32.totalorder %s149_s19, %s149_s19 }
  0xb8   :  { %p2917_p1 = scmp.lt.s32.totalorder %s2915_s0, %s2911_s28 }
  0xba   :  { %p2918_p2 = por %p2917_p1, %p2916_p0 }
  0xbc   :  { %p2919_p3 = pnand %p2918_p2, %p2912_p13 }
  0xbe   :  { %2922 = shalt.err (!%p2919_p3)
}
  0xbf   :  { %151 = dma.hbm_to_vmem [thread:$0]  %s3692_s14, 16, %s149_s19, [#allocation17]  }
  0xc0   :  { %s2974_s22 = smov [#allocation19]   ;;  %s2923_s11 = scalar_lea.hbm %s3693_s15, 16 }
  0xc1   :  { %s158_s17 = sshll.u32 %s2974_s22, 4  ;;  %p2924_p4 = scmp.ne.s32.totalorder %s3693_s15, %s2923_s11  ;;  %s159_s17 = int_to_ptr.vmem [resolvable:$true] %s158_s17 }
  0xc2   :  { %p2927_p5 = scmp.lt.u32.totalorder %s2923_s11, %s3693_s15 }
  0xc4   :  { %p2929_p6 = pnand %p2927_p5, %p2924_p4 }
  0xc6   :  { %2932 = shalt.err (!%p2929_p6)
}
  0xc7   :  { %s2933_s10 = scalar_lea.vmem %s159_s17, 16  ;;  %s2937_s14 = scalar_lea.vmem %s159_s17, 32 }
  0xc8   :  { %p2934_p7 = scmp.ne.s32.totalorder %s159_s17, %s2933_s10  ;;  %p2938_p8 = scmp.lt.s32.totalorder %s159_s17, %s159_s17 }
  0xc9   :  { %p2939_p9 = scmp.lt.s32.totalorder %s2937_s14, %s2933_s10 }
  0xcb   :  { %p2940_p10 = por %p2939_p9, %p2938_p8 }
  0xcd   :  { %p2941_p11 = pnand %p2940_p10, %p2934_p7 }
  0xcf   :  { %2944 = shalt.err (!%p2941_p11)
}
  0xd0   :  { %161 = dma.hbm_to_vmem [thread:$0]  %s3693_s15, 16, %s159_s17, [#allocation20]  }
  0xd1   :  { %2945 = dma.done.wait [#allocation3], 32  }
  0xd2   :  { %2946 = vsyncadd [#allocation3], 4294967264 }
  0xd3   :  { %2947 = dma.done.wait [#allocation5], 1040  }
  0xd4   :  { %2948 = vsyncadd [#allocation5], 4294966256 }
  0xd5   :  { %2949 = dma.done.wait [#allocation8], 32  }
  0xd6   :  { %2950 = vsyncadd [#allocation8], 4294967264 }
  0xd7   :  { %2951 = dma.done.wait [#allocation11], 2064  }
  0xd8   :  { %2952 = vsyncadd [#allocation11], 4294965232 }
  0xd9   :  { %2953 = dma.done.wait [#allocation14], 2080  }
  0xda   :  { %2954 = vsyncadd [#allocation14], 4294965216 }
  0xdb   :  { %2955 = dma.done.wait [#allocation17], 32  }
  0xdc   :  { %2956 = vsyncadd [#allocation17], 4294967264 }
  0xdd   :  { %2957 = dma.done.wait [#allocation20], 16  }
  0xde   :  { %2958 = vsyncadd [#allocation20], 4294967280  ;;  %v2975_v0 = vmov 0   ;;  %v2517_v1 = vld [vmem:[%s3680_s2 + $0x4] ss:$8 sps:$4 sm:$0xff]   ;;  %s3697_s29 = sld [smem:[#allocation28_spill]]  ;;  %v231_v42 = vlaneseq }
  0xdf   :  { %353 = vmatprep.mubr.bf16.mxu0 %v2975_v0  ;;  %v2519_v2 = vld [vmem:[%s3680_s2] ss:$8 sps:$4 sm:$0xff]   ;;  %321 = vmatprep.subr.bf16.mxu0 %v2517_v1  ;;  %v2520_v3 = vld [vmem:[%s3680_s2 + $0x14] ss:$8 sps:$4 sm:$0xff]   ;;  %v2522_v4 = vld [vmem:[%s3680_s2 + $0x10] ss:$8 sps:$4 sm:$0xff]  }
  0xe0   :  { %322 = vmatpush1.bf16.msra.mxu0 %v2519_v2  ;;  %v2523_v5 = vld [vmem:[%s3680_s2 + $0x24] ss:$8 sps:$4 sm:$0xff]   ;;  %v2525_v6 = vld [vmem:[%s3680_s2 + $0x20] ss:$8 sps:$4 sm:$0xff]   ;;  %v2526_v7 = vld [vmem:[%s3680_s2 + $0x34] ss:$8 sps:$4 sm:$0xff]  }
  0xe1   :  { %323 = vmatprep.subr.bf16.mxu0 %v2520_v3  ;;  %v2528_v8 = vld [vmem:[%s3680_s2 + $0x30] ss:$8 sps:$4 sm:$0xff]   ;;  %v2529_v9 = vld [vmem:[%s3680_s2 + $0x44] ss:$8 sps:$4 sm:$0xff]   ;;  %v2531_v10 = vld [vmem:[%s3680_s2 + $0x40] ss:$8 sps:$4 sm:$0xff]  }
  0xe2   :  { %v2532_v11 = vld [vmem:[%s3680_s2 + $0x54] ss:$8 sps:$4 sm:$0xff]   ;;  %v2534_v12 = vld [vmem:[%s3680_s2 + $0x50] ss:$8 sps:$4 sm:$0xff]   ;;  %v2535_v13 = vld [vmem:[%s3680_s2 + $0x64] ss:$8 sps:$4 sm:$0xff]  }
  0xe3   :  { %v2537_v14 = vld [vmem:[%s3680_s2 + $0x60] ss:$8 sps:$4 sm:$0xff]   ;;  %v2538_v19 = vld [vmem:[%s3680_s2 + $0x74] ss:$8 sps:$4 sm:$0xff]   ;;  %v2540_v20 = vld [vmem:[%s3680_s2 + $0x70] ss:$8 sps:$4 sm:$0xff]  }
  0xe4   :  { %324 = vmatpush1.bf16.msra.mxu0 %v2522_v4  ;;  %v199_v15 = vld [vmem:[%s3697_s29] sm:$0xff]  ;;  %v200_v16 = vld [vmem:[%s3697_s29 + $0x8] sm:$0xff]  ;;  %v201_v23 = vld [vmem:[%s3697_s29 + $0x10] sm:$0xff]  ;;  %v2976_v31 = vmov 0.0   ;;  %vm2977_vm0 = vmmov 0   ;;  %v3319_v43 = vshrl.u32 %v231_v42, 7 }
  0xe5   :  { %325 = vmatprep.subr.bf16.mxu0 %v2523_v5  ;;  %v203_v17 = vld [vmem:[%s3679_s1] sm:$0xff]  ;;  %v204_v18 = vld [vmem:[%s3679_s1 + $0x8] sm:$0xff]  ;;  %v202_v24 = vld [vmem:[%s3697_s29 + $0x18] sm:$0xff]  ;;  %v374_v34 = vpack.c.bf16 %v200_v16, %v199_v15  ;;  %vm502_vm1 = vcmask 261120   ;;  %s2979_s7 = smov 32   ;;  %vm550_vm2 = vcmask 130048  }
  0xe6   :  { %v207_v21 = vadd.f32 %v203_v17, %v199_v15  ;;  %v208_v22 = vadd.f32 %v204_v18, %v200_v16  ;;  %v205_v25 = vld [vmem:[%s3679_s1 + $0x10] sm:$0xff]  ;;  %v206_v26 = vld [vmem:[%s3679_s1 + $0x18] sm:$0xff]  ;;  %v2541_v32 = vld [vmem:[%s3682_s4] sm:$0xff]   ;;  %v375_v41 = vpack.c.bf16 %v202_v24, %v201_v23  ;;  %v233_v44 = vsub.s32 0, %v3319_v43 }
  0xe7   :  { %v209_v28 = vadd.f32 %v205_v25, %v201_v23  ;;  %v210_v29 = vadd.f32 %v206_v26, %v202_v24  ;;  %v2542_v33 = vld [vmem:[%s3682_s4 + $0x8] sm:$0xff]   ;;  %2330 = vmatprep.subr.bf16.mxu1 %v2541_v32  ;;  %2346 = vmatprep.mubr.bf16.mxu1 %v374_v34  ;;  %v2543_v35 = vld [vmem:[%s3682_s4 + $0x10] sm:$0xff]   ;;  %v2544_v36 = vld [vmem:[%s3682_s4 + $0x18] sm:$0xff]   ;;  %v237_v46 = vsub.s32 1, %v3319_v43  ;;  %vm1010_vm3 = vcmask 523264  }
  0xe8   :  { %326 = vmatpush1.bf16.msra.mxu0 %v2525_v6  ;;  %v211_v27 = vpack.c.bf16 %v208_v22, %v207_v21  ;;  %2331 = vmatpush3.bf16.msra.mxu1 %v2541_v32  ;;  %v2545_v37 = vld [vmem:[%s3682_s4 + $0x20] sm:$0xff]   ;;  %v2546_v38 = vld [vmem:[%s3682_s4 + $0x28] sm:$0xff]   ;;  %v2547_v39 = vld [vmem:[%s3682_s4 + $0x30] sm:$0xff]   ;;  %vm1013_vm4 = vcmask 785408  }
  0xe9   :  { %327 = vmatprep.subr.bf16.mxu0 %v2526_v7  ;;  %v212_v30 = vpack.c.bf16 %v210_v29, %v209_v28  ;;  %2332 = vmatprep.subr.bf16.mxu1 %v2542_v33  ;;  %v2548_v40 = vld [vmem:[%s3682_s4 + $0x38] sm:$0xff]   ;;  %v229_v45 = vld [vmem:[#allocation2] sm:$0x3]  ;;  %s2978_s4 = smov 96   ;;  %v2179_v15 = vld [vmem:[#allocation4] ss:$0 sm:$0xff] }
  0xea   :  { %v234_v47 = vrot.slane %v229_v45, %v233_v44  ;;  %v238_v49 = vrot.slane %v229_v45, %v237_v46 }
  0xec   :  { %328 = vmatpush1.bf16.msra.mxu0 %v2528_v8  ;;  %2333 = vmatpush3.bf16.msra.mxu1 %v2542_v33 }
  0xed   :  { %329 = vmatprep.subr.bf16.mxu0 %v2529_v9  ;;  %2334 = vmatprep.subr.bf16.mxu1 %v2543_v35 }
  0xf0   :  { %330 = vmatpush1.bf16.msra.mxu0 %v2531_v10  ;;  %2335 = vmatpush3.bf16.msra.mxu1 %v2543_v35 }
  0xf1   :  { %331 = vmatprep.subr.bf16.mxu0 %v2532_v11  ;;  %2336 = vmatprep.subr.bf16.mxu1 %v2544_v36 }
  0xf4   :  { %332 = vmatpush1.bf16.msra.mxu0 %v2534_v12  ;;  %2337 = vmatpush3.bf16.msra.mxu1 %v2544_v36 }
  0xf5   :  { %333 = vmatprep.subr.bf16.mxu0 %v2535_v13  ;;  %2338 = vmatprep.subr.bf16.mxu1 %v2545_v37 }
  0xf8   :  { %334 = vmatpush1.bf16.msra.mxu0 %v2537_v14  ;;  %2339 = vmatpush3.bf16.msra.mxu1 %v2545_v37 }
  0xf9   :  { %335 = vmatprep.subr.bf16.mxu0 %v2538_v19  ;;  %2340 = vmatprep.subr.bf16.mxu1 %v2546_v38 }
  0xfc   :  { %336 = vmatpush1.bf16.msra.mxu0 %v2540_v20  ;;  %2341 = vmatpush3.bf16.msra.mxu1 %v2546_v38 }
  0xfd   :  { %2350 = vmatprep.subr.bf16.mxu0 %v2976_v31  ;;  %2342 = vmatprep.subr.bf16.mxu1 %v2547_v39 }
  0xff   :  { %354 = vmatmul.mubr.bf16.vlgmr.msra.gmra.mrb[0].mxu0 %v211_v27 }
 0x100   :  { %363 = vmatprep.mubr.bf16.mxu0 %v2975_v0  ;;  %2343 = vmatpush3.bf16.msra.mxu1 %v2547_v39 }
 0x101   :  { %2344 = vmatprep.subr.bf16.mxu1 %v2548_v40 }
 0x104   :  { %2345 = vmatpush3.bf16.msra.mxu1 %v2548_v40 }
 0x105   :  { %2362 = vmatprep.subr.bf16.mxu1 %v2976_v31 }
 0x107   :  { %364 = vmatmul.mubr.bf16.gmra.mrb[4].mxu0 %v212_v30  ;;  %2347 = vmatmul.mubr.bf16.vlgmr.msra.gmra.mrb[0].mxu1 %v375_v41 }
 0x108   :  { %2352 = vmatprep.mubr.msk.bf16.mxu0 %vm2977_vm0, %v2976_v31  ;;  %2364 = vmatprep.mubr.msk.bf16.mxu1 %vm2977_vm0, %v2976_v31 }
 0x1d2   :  { %v355_v48 = vpop.f32.mrb[0].mxu0 }
 0x1d3   :  { %v357_v50 = vpop.f32.mrb[1].mxu0  ;;  %v356_v52 = vadd.f32 %v355_v48, %v234_v47 }
 0x1d4   :  { %v359_v51 = vpop.f32.mrb[2].mxu0  ;;  %v358_v55 = vadd.f32 %v357_v50, %v238_v49 }
 0x1d5   :  { %v360_v53 = vadd.f32 %v359_v51, %v234_v47  ;;  %v361_v54 = vpop.f32.mrb[3].mxu0 }
 0x1d6   :  { %v362_v56 = vadd.f32 %v361_v54, %v238_v49 }
 0x1d7   :  { %v496_v57 = vpack.c.bf16 %v360_v53, %v356_v52 }
 0x1d8   :  { %v498_v58 = vpack.c.bf16 %v362_v56, %v358_v55 }
 0x1da   :  { %744 = vrot.lane.b32.xlu1 %v498_v58, %s2966_s3  ;;  %622 = vrot.lane.b32.xlu0 %v498_v58, %s2978_s4  ;;  %v507_v59 = vsel %vm502_vm1, %v498_v58, 0  ;;  %v365_v60 = vpop.f32.mrb[4].mxu0  ;;  %v2348_v16 = vpop.f32.mrb[0].mxu1 }
 0x1db   :  { %2351 = vmatpush3.bf16.xpose.msra.mxu0 %v507_v59  ;;  %v366_v61 = vadd.f32 %v365_v60, %v234_v47  ;;  %v367_v62 = vpop.f32.mrb[5].mxu0  ;;  %v490_v18 = vadd.f32 %v2348_v16, %v2179_v15  ;;  %v481_v19 = vpop.f32.mrb[1].mxu1 }
 0x1dc   :  { %v368_v63 = vadd.f32 %v367_v62, %v238_v49  ;;  %v369_v1 = vpop.f32.mrb[6].mxu0  ;;  %2356 = vmatprep.subr.bf16.mxu0 %v2976_v31  ;;  %v482_v21 = vadd.f32 %v2179_v15, %v481_v19  ;;  %v2349_v22 = vpop.f32.mrb[2].mxu1 }
 0x1dd   :  { %v370_v2 = vadd.f32 %v369_v1, %v234_v47  ;;  %v371_v3 = vpop.f32.mrb[7].mxu0  ;;  %v493_v23 = vadd.f32 %v2349_v22, %v2179_v15  ;;  %v484_v24 = vpop.f32.mrb[3].mxu1 }
 0x1de   :  { %742 = vrot.lane.b32.xlu1 %v496_v57, %s2966_s3  ;;  %619 = vrot.lane.b32.xlu0 %v496_v57, %s2978_s4  ;;  %v372_v4 = vadd.f32 %v371_v3, %v238_v49  ;;  %v485_v25 = vadd.f32 %v2179_v15, %v484_v24 }
 0x1df   :  { %v497_v5 = vpack.c.bf16 %v370_v2, %v366_v61  ;;  %v3361_v27 = vpack.c.bf16 %v493_v23, %v490_v18 }
 0x1e0   :  { %v499_v6 = vpack.c.bf16 %v372_v4, %v368_v63  ;;  %v3363_v28 = vpack.c.bf16 %v485_v25, %v482_v21 }
 0x1e2   :  { %863 = vrot.lane.b32.xlu1 %v496_v57, %s2979_s7  ;;  %865 = vrot.lane.b32.xlu0 %v498_v58, %s2979_s7  ;;  %v1020_v20 = vsel %vm502_vm1, %v499_v6, 0 }
 0x1e3   :  { %2353 = vmatmul.mubr.msk.bf16.vlgmr.msra.gmra.mrb[8].mxu0 %vm502_vm1, %v496_v57 }
 0x1e4   :  { %2358 = vmatprep.mubr.msk.bf16.mxu0 %vm2977_vm0, %v2976_v31  ;;  %2357 = vmatpush3.bf16.msra.mxu0 %v3363_v28 }
 0x1e5   :  { %2368 = vmatprep.subr.bf16.mxu0 %v2976_v31 }
 0x1e6   :  { %1134 = vrot.lane.b32.xlu0 %v499_v6, %s2978_s4  ;;  %1131 = vrot.lane.b32.xlu1 %v497_v5, %s2978_s4 }
 0x1ea   :  { %1256 = vrot.lane.b32.xlu0 %v499_v6, %s2966_s3  ;;  %1254 = vrot.lane.b32.xlu1 %v497_v5, %s2966_s3 }
 0x1ee   :  { %1377 = vrot.lane.b32.xlu0 %v499_v6, %s2979_s7  ;;  %1375 = vrot.lane.b32.xlu1 %v497_v5, %s2979_s7 }
 0x24c   :  { %v623_v7 = vpop.permute.xlu0 %622  ;;  %v745_v9 = vpop.permute.xlu1 %744 }
 0x24d   :  { %v628_v8 = vsel %vm502_vm1, %v623_v7, 0  ;;  %v750_v11 = vsel %vm502_vm1, %v745_v9, 0 }
 0x24e   :  { %2363 = vmatpush3.bf16.xpose.msra.mxu1 %v628_v8 }
 0x24f   :  { %2374 = vmatprep.subr.bf16.mxu1 %v2976_v31 }
 0x250   :  { %v620_v10 = vpop.permute.xlu0 %619  ;;  %v743_v13 = vpop.permute.xlu1 %742 }
 0x254   :  { %v866_v12 = vpop.permute.xlu0 %865  ;;  %v864_v17 = vpop.permute.xlu1 %863 }
 0x255   :  { %2365 = vmatmul.mubr.msk.bf16.vlgmr.msra.gmra.mrb[4].mxu1 %vm502_vm1, %v620_v10  ;;  %v871_v14 = vsel %vm502_vm1, %v866_v12, 0 }
 0x256   :  { %2375 = vmatpush3.bf16.xpose.msra.mxu1 %v750_v11  ;;  %2376 = vmatprep.mubr.msk.bf16.mxu1 %vm2977_vm0, %v2976_v31 }
 0x257   :  { %2386 = vmatprep.subr.bf16.mxu1 %v2976_v31 }
 0x258   :  { %v1135_v26 = vpop.permute.xlu0 %1134  ;;  %v1132_v32 = vpop.permute.xlu1 %1131 }
 0x259   :  { %v1140_v29 = vsel %vm502_vm1, %v1135_v26, 0 }
 0x25c   :  { %v1257_v30 = vpop.permute.xlu0 %1256  ;;  %v1255_v35 = vpop.permute.xlu1 %1254 }
 0x25d   :  { %2377 = vmatmul.mubr.msk.bf16.vlgmr.msra.gmra.mrb[8].mxu1 %vm502_vm1, %v743_v13  ;;  %v1262_v33 = vsel %vm502_vm1, %v1257_v30, 0 }
 0x25e   :  { %2387 = vmatpush3.bf16.xpose.msra.mxu1 %v871_v14  ;;  %2388 = vmatprep.mubr.msk.bf16.mxu1 %vm2977_vm0, %v2976_v31 }
 0x25f   :  { %2398 = vmatprep.subr.bf16.mxu1 %v2976_v31 }
 0x260   :  { %v1378_v34 = vpop.permute.xlu0 %1377  ;;  %v1376_v37 = vpop.permute.xlu1 %1375 }
 0x261   :  { %v1383_v36 = vsel %vm502_vm1, %v1378_v34, 0 }
 0x265   :  { %2389 = vmatmul.mubr.msk.bf16.vlgmr.msra.gmra.mrb[12].mxu1 %vm502_vm1, %v864_v17 }
 0x266   :  { %2399 = vmatpush3.bf16.xpose.msra.mxu1 %v1020_v20  ;;  %2400 = vmatprep.mubr.msk.bf16.mxu1 %vm2977_vm0, %v2976_v31 }
 0x267   :  { %2410 = vmatprep.subr.bf16.mxu1 %v2976_v31 }
 0x26d   :  { %2401 = vmatmul.mubr.msk.bf16.vlgmr.msra.gmra.mrb[16].mxu1 %vm502_vm1, %v497_v5 }
 0x26e   :  { %2411 = vmatpush3.bf16.xpose.msra.mxu1 %v1140_v29  ;;  %2412 = vmatprep.mubr.msk.bf16.mxu1 %vm2977_vm0, %v2976_v31 }
 0x26f   :  { %2422 = vmatprep.subr.bf16.mxu1 %v2976_v31 }
 0x275   :  { %2413 = vmatmul.mubr.msk.bf16.vlgmr.msra.gmra.mrb[20].mxu1 %vm502_vm1, %v1132_v32 }
 0x276   :  { %2423 = vmatpush3.bf16.xpose.msra.mxu1 %v1262_v33  ;;  %2424 = vmatprep.mubr.msk.bf16.mxu1 %vm2977_vm0, %v2976_v31 }
 0x277   :  { %2434 = vmatprep.subr.bf16.mxu1 %v2976_v31 }
 0x27d   :  { %2425 = vmatmul.mubr.msk.bf16.vlgmr.msra.gmra.mrb[24].mxu1 %vm502_vm1, %v1255_v35 }
 0x27e   :  { %2435 = vmatpush3.bf16.xpose.msra.mxu1 %v1383_v36  ;;  %2436 = vmatprep.mubr.msk.bf16.mxu1 %vm2977_vm0, %v2976_v31 }
 0x285   :  { %2437 = vmatmul.mubr.msk.bf16.vlgmr.msra.gmra.mrb[28].mxu1 %vm502_vm1, %v1376_v37 }
 0x2b6   :  { %v3382_v38 = vpop.f32.mrb[8].mxu0 }
 0x2b7   :  { %v2354_v39 = vpop.f32.mrb[9].mxu0  ;;  %v551_v40 = vsel %vm550_vm2, %v3382_v38, -inf }
 0x2b8   :  { %552 = vmax.xlane.f32.xlu0 %v551_v40  ;;  %v546_v41 = vpop.f32.mrb[10].mxu0 }
 0x2b9   :  { %v2355_v42 = vpop.f32.mrb[11].mxu0  ;;  %v554_v45 = vsel %vm550_vm2, %v546_v41, -inf }
 0x2ba   :  { %555 = vmax.xlane.f32.xlu1 %v554_v45 }
 0x328   :  { %v3387_v47 = vpop.f32.mrb[4].mxu1 }
 0x329   :  { %v2366_v48 = vpop.f32.mrb[5].mxu1  ;;  %v671_v49 = vsel %vm550_vm2, %v3387_v47, -inf }
 0x32a   :  { %v3391_v50 = vpop.f32.mrb[6].mxu1  ;;  %672 = vmax.xlane.f32.xlu0 %v671_v49 }
 0x32b   :  { %v2367_v51 = vpop.f32.mrb[7].mxu1  ;;  %v674_v52 = vsel %vm550_vm2, %v3391_v50, -inf }
 0x32e   :  { %675 = vmax.xlane.f32.xlu0 %v674_v52 }
 0x330   :  { %v3395_v53 = vpop.f32.mrb[8].mxu1 }
 0x331   :  { %v2378_v54 = vpop.f32.mrb[9].mxu1  ;;  %v793_v55 = vsel %vm550_vm2, %v3395_v53, -inf }
 0x332   :  { %v3399_v56 = vpop.f32.mrb[10].mxu1  ;;  %794 = vmax.xlane.f32.xlu1 %v793_v55 }
 0x333   :  { %v2379_v57 = vpop.f32.mrb[11].mxu1  ;;  %v796_v58 = vsel %vm550_vm2, %v3399_v56, -inf }
 0x334   :  { %797 = vmax.xlane.f32.xlu0 %v796_v58 }
 0x338   :  { %v3403_v59 = vpop.f32.mrb[12].mxu1 }
 0x339   :  { %v2390_v60 = vpop.f32.mrb[13].mxu1  ;;  %v914_v61 = vsel %vm550_vm2, %v3403_v59, -inf }
 0x33a   :  { %v3407_v62 = vpop.f32.mrb[14].mxu1  ;;  %915 = vmax.xlane.f32.xlu1 %v914_v61 }
 0x33b   :  { %v2391_v63 = vpop.f32.mrb[15].mxu1  ;;  %v917_v1 = vsel %vm550_vm2, %v3407_v62, -inf }
 0x33c   :  { %918 = vmax.xlane.f32.xlu0 %v917_v1 }
 0x340   :  { %v3411_v2 = vpop.f32.mrb[16].mxu1 }
 0x341   :  { %v2402_v3 = vpop.f32.mrb[17].mxu1  ;;  %v1063_v33 = vsel %vm550_vm2, %v3411_v2, -inf }
 0x342   :  { %v3413_v4 = vpop.f32.mrb[18].mxu1 }
 0x343   :  { %v2403_v5 = vpop.f32.mrb[19].mxu1  ;;  %v1066_v6 = vsel %vm550_vm2, %v3413_v4, -inf }
 0x344   :  { %1067 = vmax.xlane.f32.xlu0 %v1066_v6 }
 0x345   :  { %v553_v29 = vpop.xlane.xlu0 %552 }
 0x346   :  { %v557_v30 = vsub.f32 %v3382_v38, %v553_v29 }
 0x347   :  { %v556_v7 = vpop.xlane.xlu1 %555 }
 0x348   :  { %v558_v8 = vsub.f32 %v546_v41, %v556_v7  ;;  %v3417_v9 = vpop.f32.mrb[20].mxu1  ;;  %v559_v32 = vmul.f32 1.442695, %v557_v30 }
 0x349   :  { %v2414_v10 = vpop.f32.mrb[21].mxu1  ;;  %v1183_v34 = vsel %vm550_vm2, %v3417_v9, -inf }
 0x34a   :  { %v561_v11 = vmul.f32 1.442695, %v558_v8  ;;  %v3419_v12 = vpop.f32.mrb[22].mxu1 }
 0x34b   :  { %695 = vrot.lane.b32.xlu1 %v3363_v28, %s2978_s4  ;;  %v1186_v13 = vsel %vm550_vm2, %v3419_v12, -inf  ;;  %v2415_v14 = vpop.f32.mrb[23].mxu1 }
 0x34c   :  { %2597 = vpow2.f32 %v561_v11  ;;  %1187 = vmax.xlane.f32.xlu0 %v1186_v13 }
 0x34d   :  { %2599 = vpow2.f32 %v559_v32 }
 0x350   :  { %v3425_v15 = vpop.f32.mrb[24].mxu1 }
 0x351   :  { %v2426_v16 = vpop.f32.mrb[25].mxu1  ;;  %v1305_v35 = vsel %vm550_vm2, %v3425_v15, -inf }
 0x352   :  { %v3427_v17 = vpop.f32.mrb[26].mxu1 }
 0x353   :  { %v1308_v18 = vsel %vm550_vm2, %v3427_v17, -inf  ;;  %v2427_v19 = vpop.f32.mrb[27].mxu1 }
 0x354   :  { %1309 = vmax.xlane.f32.xlu0 %v1308_v18 }
 0x356   :  { %v3431_v20 = vpop.eup %2597 }
 0x357   :  { %v566_v21 = vsel %vm550_vm2, %v3431_v20, 0.0  ;;  %v3448_v36 = vpop.eup %2599 }
 0x358   :  { %v3435_v22 = vpop.f32.mrb[28].mxu1  ;;  %567 = vadd.xlane.f32.xlu0 %v566_v21  ;;  %v563_v37 = vsel %vm550_vm2, %v3448_v36, 0.0 }
 0x359   :  { %v2438_v23 = vpop.f32.mrb[29].mxu1  ;;  %v1426_v38 = vsel %vm550_vm2, %v3435_v22, -inf }
 0x35a   :  { %v3437_v24 = vpop.f32.mrb[30].mxu1 }
 0x35b   :  { %v1429_v25 = vsel %vm550_vm2, %v3437_v24, -inf  ;;  %v2439_v26 = vpop.f32.mrb[31].mxu1 }
 0x35c   :  { %1430 = vmax.xlane.f32.xlu0 %v1429_v25 }
 0x36f   :  { %1064 = vmax.xlane.f32.xlu1 %v1063_v33 }
 0x373   :  { %1184 = vmax.xlane.f32.xlu1 %v1183_v34 }
 0x377   :  { %1306 = vmax.xlane.f32.xlu1 %v1305_v35 }
 0x37b   :  { %564 = vadd.xlane.f32.xlu1 %v563_v37 }
 0x37f   :  { %1427 = vmax.xlane.f32.xlu1 %v1426_v38 }
 0x3b7   :  { %v673_v39 = vpop.xlane.xlu0 %672 }
 0x3b8   :  { %v677_v40 = vsub.f32 %v3387_v47, %v673_v39 }
 0x3ba   :  { %v679_v41 = vmul.f32 1.442695, %v677_v40 }
 0x3bb   :  { %v676_v42 = vpop.xlane.xlu0 %675 }
 0x3bc   :  { %2601 = vpow2.f32 %v679_v41  ;;  %v678_v45 = vsub.f32 %v3391_v50, %v676_v42 }
 0x3be   :  { %v681_v48 = vmul.f32 1.442695, %v678_v45 }
 0x3bf   :  { %v795_v47 = vpop.xlane.xlu1 %794 }
 0x3c0   :  { %2603 = vpow2.f32 %v681_v48  ;;  %v799_v50 = vsub.f32 %v3395_v53, %v795_v47 }
 0x3c1   :  { %v798_v55 = vpop.xlane.xlu0 %797 }
 0x3c2   :  { %v800_v58 = vsub.f32 %v3399_v56, %v798_v55  ;;  %v801_v60 = vmul.f32 1.442695, %v799_v50 }
 0x3c4   :  { %v803_v1 = vmul.f32 1.442695, %v800_v58  ;;  %2605 = vpow2.f32 %v801_v60 }
 0x3c6   :  { %v3456_v49 = vpop.eup %2601  ;;  %2607 = vpow2.f32 %v803_v1 }
 0x3c7   :  { %v683_v51 = vsel %vm550_vm2, %v3456_v49, 0.0  ;;  %v916_v57 = vpop.xlane.xlu1 %915 }
 0x3c8   :  { %684 = vadd.xlane.f32.xlu1 %v683_v51  ;;  %v920_v61 = vsub.f32 %v3403_v59, %v916_v57 }
 0x3c9   :  { %v919_v63 = vpop.xlane.xlu0 %918 }
 0x3ca   :  { %v3460_v52 = vpop.eup %2603  ;;  %v922_v3 = vmul.f32 1.442695, %v920_v61  ;;  %v921_v5 = vsub.f32 %v3407_v62, %v919_v63 }
 0x3cb   :  { %v686_v54 = vsel %vm550_vm2, %v3460_v52, 0.0  ;;  %v3473_v8 = vpop.permute.xlu1 %695 }
 0x3cc   :  { %687 = vadd.xlane.f32.xlu0 %v686_v54  ;;  %2609 = vpow2.f32 %v922_v3 }
 0x3ce   :  { %v3475_v10 = vpop.eup %2605 }
 0x3cf   :  { %v805_v62 = vsel %vm550_vm2, %v3475_v10, 0.0 }
 0x3d0   :  { %v3477_v59 = vpop.eup %2607 }
 0x3d1   :  { %v1068_v6 = vpop.xlane.xlu0 %1067  ;;  %v808_v21 = vsel %vm550_vm2, %v3477_v59, 0.0 }
 0x3d2   :  { %v1070_v7 = vsub.f32 %v3413_v4, %v1068_v6 }
 0x3d4   :  { %v1073_v53 = vmul.f32 1.442695, %v1070_v7 }
 0x3d6   :  { %v3481_v14 = vpop.eup %2609 }
 0x3d7   :  { %v926_v23 = vsel %vm550_vm2, %v3481_v14, 0.0 }
 0x3d9   :  { %937 = vrot.lane.b32.xlu1 %v3363_v28, %s2979_s7  ;;  %v1188_v56 = vpop.xlane.xlu0 %1187 }
 0x3da   :  { %v1190_v4 = vsub.f32 %v3419_v12, %v1188_v56 }
 0x3e1   :  { %v1310_v11 = vpop.xlane.xlu0 %1309 }
 0x3e2   :  { %816 = vrot.lane.b32.xlu0 %v3363_v28, %s2966_s3  ;;  %v924_v28 = vmul.f32 1.442695, %v921_v5  ;;  %v1312_v30 = vsub.f32 %v3427_v17, %v1310_v11 }
 0x3e4   :  { %2611 = vpow2.f32 %v924_v28  ;;  %v1315_v35 = vmul.f32 1.442695, %v1312_v30 }
 0x3e5   :  { %2613 = vpow2.f32 %v1073_v53  ;;  %v568_v29 = vpop.xlane.xlu0 %567 }
 0x3e9   :  { %v1431_v37 = vpop.xlane.xlu0 %1430 }
 0x3ea   :  { %v1433_v39 = vsub.f32 %v3437_v24, %v1431_v37 }
 0x3ec   :  { %v1436_v48 = vmul.f32 1.442695, %v1433_v39 }
 0x3ee   :  { %v3489_v25 = vpop.eup %2611 }
 0x3ef   :  { %v929_v33 = vsel %vm550_vm2, %v3489_v25, 0.0  ;;  %v3495_v34 = vpop.eup %2613 }
 0x3f0   :  { %v1078_v38 = vsel %vm550_vm2, %v3495_v34, 0.0 }
 0x3fc   :  { %v1065_v13 = vpop.xlane.xlu1 %1064 }
 0x3fd   :  { %v1069_v16 = vsub.f32 %v3411_v2, %v1065_v13  ;;  %806 = vadd.xlane.f32.xlu1 %v805_v62  ;;  %v1193_v2 = vmul.f32 1.442695, %v1190_v4 }
 0x3ff   :  { %v1071_v18 = vmul.f32 1.442695, %v1069_v16 }
 0x400   :  { %v1185_v19 = vpop.xlane.xlu1 %1184 }
 0x401   :  { %2615 = vpow2.f32 %v1071_v18  ;;  %v1189_v26 = vsub.f32 %v3417_v9, %v1185_v19  ;;  %809 = vadd.xlane.f32.xlu0 %v808_v21  ;;  %927 = vadd.xlane.f32.xlu1 %v926_v23 }
 0x403   :  { %v1191_v12 = vmul.f32 1.442695, %v1189_v26 }
 0x404   :  { %v1307_v32 = vpop.xlane.xlu1 %1306 }
 0x405   :  { %2617 = vpow2.f32 %v1191_v12  ;;  %930 = vadd.xlane.f32.xlu0 %v929_v33  ;;  %v1311_v3 = vsub.f32 %v3425_v15, %v1307_v32 }
 0x406   :  { %2619 = vpow2.f32 %v1193_v2 }
 0x407   :  { %2621 = vrcp.f32 %v568_v29  ;;  %v1313_v5 = vmul.f32 1.442695, %v1311_v3 }
 0x408   :  { %v565_v9 = vpop.xlane.xlu1 %564 }
 0x409   :  { %1079 = vadd.xlane.f32.xlu0 %v1078_v38  ;;  %2623 = vrcp.f32 %v565_v9 }
 0x40a   :  { %2625 = vpow2.f32 %v1315_v35 }
 0x40b   :  { %v3499_v17 = vpop.eup %2615 }
 0x40c   :  { %v1428_v40 = vpop.xlane.xlu1 %1427  ;;  %v1075_v41 = vsel %vm550_vm2, %v3499_v17, 0.0 }
 0x40d   :  { %v1432_v42 = vsub.f32 %v3435_v22, %v1428_v40  ;;  %1076 = vadd.xlane.f32.xlu1 %v1075_v41 }
 0x40f   :  { %v3505_v45 = vpop.eup %2617  ;;  %v1434_v51 = vmul.f32 1.442695, %v1432_v42 }
 0x410   :  { %v1195_v54 = vsel %vm550_vm2, %v3505_v45, 0.0  ;;  %v3509_v47 = vpop.eup %2619 }
 0x411   :  { %2627 = vpow2.f32 %v1434_v51  ;;  %1196 = vadd.xlane.f32.xlu0 %v1195_v54  ;;  %v2622_v50 = vpop.eup %2621  ;;  %v1198_v55 = vsel %vm550_vm2, %v3509_v47, 0.0 }
 0x412   :  { %2629 = vpow2.f32 %v1436_v48  ;;  %v572_v22 = vmul.f32 %v2622_v50, %v3431_v20 }
 0x413   :  { %v2624_v24 = vpop.eup %2623  ;;  %2631 = vpow2.f32 %v1313_v5 }
 0x414   :  { %v3513_v57 = vpop.eup %2625  ;;  %v571_v58 = vmul.f32 %v2624_v24, %v3448_v36 }
 0x415   :  { %1199 = vadd.xlane.f32.xlu0 %v1198_v55  ;;  %v1320_v61 = vsel %vm550_vm2, %v3513_v57, 0.0 }
 0x416   :  { %v573_v60 = vpack.c.bf16 %v572_v22, %v571_v58 }
 0x418   :  { %2359 = vmatmul.mubr.msk.bf16.vlgmr.msra.gmra.mrb[12].mxu0 %vm550_vm2, %v573_v60 }
 0x419   :  { %1321 = vadd.xlane.f32.xlu0 %v1320_v61  ;;  %2369 = vmatpush3.bf16.msra.mxu0 %v3473_v8 }
 0x41a   :  { %2370 = vmatprep.mubr.msk.bf16.mxu0 %vm2977_vm0, %v2976_v31  ;;  %2380 = vmatprep.subr.bf16.mxu0 %v2976_v31 }
 0x41b   :  { %v3523_v63 = vpop.eup %2627 }
 0x41c   :  { %v1438_v20 = vsel %vm550_vm2, %v3523_v63, 0.0  ;;  %v3528_v36 = vpop.eup %2629 }
 0x41d   :  { %1439 = vadd.xlane.f32.xlu0 %v1438_v20  ;;  %v1441_v1 = vsel %vm550_vm2, %v3528_v36, 0.0  ;;  %v3537_v6 = vpop.eup %2631 }
 0x41e   :  { %1207 = vrot.lane.b32.xlu1 %v3361_v27, %s2978_s4  ;;  %v1317_v28 = vsel %vm550_vm2, %v3537_v6, 0.0 }
 0x421   :  { %1442 = vadd.xlane.f32.xlu0 %v1441_v1 }
 0x437   :  { %1328 = vrot.lane.b32.xlu0 %v3361_v27, %s2966_s3 }
 0x442   :  { %1318 = vadd.xlane.f32.xlu1 %v1317_v28 }
 0x453   :  { %1449 = vrot.lane.b32.xlu1 %v3361_v27, %s2979_s7 }
 0x455   :  { %v685_v7 = vpop.xlane.xlu1 %684 }
 0x456   :  { %2633 = vrcp.f32 %v685_v7 }
 0x459   :  { %v688_v53 = vpop.xlane.xlu0 %687  ;;  %v938_v16 = vpop.permute.xlu1 %937 }
 0x45a   :  { %2635 = vrcp.f32 %v688_v53 }
 0x45d   :  { %v817_v62 = vpop.permute.xlu0 %816 }
 0x460   :  { %v2634_v8 = vpop.eup %2633 }
 0x461   :  { %v691_v56 = vmul.f32 %v2634_v8, %v3456_v49 }
 0x464   :  { %v2636_v15 = vpop.eup %2635 }
 0x465   :  { %v692_v11 = vmul.f32 %v2636_v15, %v3460_v52 }
 0x467   :  { %v693_v13 = vpack.c.bf16 %v692_v11, %v691_v56 }
 0x469   :  { %2371 = vmatmul.mubr.msk.bf16.vlgmr.msra.gmra.mrb[16].mxu0 %vm550_vm2, %v693_v13 }
 0x46a   :  { %2381 = vmatpush3.bf16.msra.mxu0 %v817_v62  ;;  %2382 = vmatprep.mubr.msk.bf16.mxu0 %vm2977_vm0, %v2976_v31 }
 0x46b   :  { %2392 = vmatprep.subr.bf16.mxu0 %v2976_v31 }
 0x48a   :  { %v807_v4 = vpop.xlane.xlu1 %806 }
 0x48b   :  { %2637 = vrcp.f32 %v807_v4 }
 0x48e   :  { %v810_v18 = vpop.xlane.xlu0 %809  ;;  %v928_v19 = vpop.xlane.xlu1 %927 }
 0x48f   :  { %2639 = vrcp.f32 %v810_v18 }
 0x492   :  { %v931_v21 = vpop.xlane.xlu0 %930 }
 0x493   :  { %2641 = vrcp.f32 %v931_v21 }
 0x494   :  { %2643 = vrcp.f32 %v928_v19 }
 0x495   :  { %v2638_v49 = vpop.eup %2637 }
 0x496   :  { %v813_v23 = vmul.f32 %v2638_v49, %v3475_v10  ;;  %v1080_v29 = vpop.xlane.xlu0 %1079 }
 0x499   :  { %v2640_v52 = vpop.eup %2639 }
 0x49a   :  { %v814_v26 = vmul.f32 %v2640_v52, %v3477_v59  ;;  %v1077_v2 = vpop.xlane.xlu1 %1076 }
 0x49b   :  { %2645 = vrcp.f32 %v1077_v2 }
 0x49c   :  { %v815_v30 = vpack.c.bf16 %v814_v26, %v813_v23  ;;  %2647 = vrcp.f32 %v1080_v29  ;;  %v2549_v26 = vld [vmem:[#allocation6] sm:$0xff]   ;;  %v2550_v29 = vld [vmem:[#allocation6 + $0x8] sm:$0xff]  }
 0x49d   :  { %v2642_v12 = vpop.eup %2641  ;;  %2446 = vmatprep.subr.bf16.mxu1 %v2549_v26 }
 0x49e   :  { %v1197_v32 = vpop.xlane.xlu0 %1196  ;;  %2383 = vmatmul.mubr.msk.bf16.vlgmr.msra.gmra.mrb[20].mxu0 %vm550_vm2, %v815_v30  ;;  %v2644_v33 = vpop.eup %2643  ;;  %v935_v35 = vmul.f32 %v2642_v12, %v3489_v25  ;;  %2447 = vmatpush3.bf16.msra.mxu1 %v2549_v26  ;;  %v2551_v30 = vld [vmem:[#allocation6 + $0x10] sm:$0xff]  }
 0x49f   :  { %2393 = vmatpush3.bf16.msra.mxu0 %v938_v16  ;;  %2394 = vmatprep.mubr.msk.bf16.mxu0 %vm2977_vm0, %v2976_v31  ;;  %v934_v10 = vmul.f32 %v2644_v33, %v3481_v14  ;;  %v1208_v48 = vpop.permute.xlu1 %1207 }
 0x4a0   :  { %2404 = vmatprep.subr.bf16.mxu0 %v2976_v31  ;;  %2448 = vmatprep.subr.bf16.mxu1 %v2550_v29 }
 0x4a1   :  { %v936_v37 = vpack.c.bf16 %v935_v35, %v934_v10  ;;  %v2552_v35 = vld [vmem:[#allocation6 + $0x18] sm:$0xff]  }
 0x4a2   :  { %v1200_v59 = vpop.xlane.xlu0 %1199  ;;  %2449 = vmatpush3.bf16.msra.mxu1 %v2550_v29 }
 0x4a3   :  { %2649 = vrcp.f32 %v1200_v59  ;;  %2450 = vmatprep.subr.bf16.mxu1 %v2551_v30 }
 0x4a4   :  { %2651 = vrcp.f32 %v1197_v32 }
 0x4a5   :  { %v2646_v9 = vpop.eup %2645 }
 0x4a6   :  { %v1322_v38 = vpop.xlane.xlu0 %1321  ;;  %2395 = vmatmul.mubr.msk.bf16.vlgmr.msra.gmra.mrb[24].mxu0 %vm550_vm2, %v936_v37  ;;  %v2648_v39 = vpop.eup %2647  ;;  %v1083_v25 = vmul.f32 %v2646_v9, %v3499_v17  ;;  %2451 = vmatpush3.bf16.msra.mxu1 %v2551_v30  ;;  %v2553_v37 = vld [vmem:[#allocation6 + $0x20] sm:$0xff]   ;;  %v2554_v9 = vld [vmem:[#allocation6 + $0x28] sm:$0xff]  }
 0x4a7   :  { %2405 = vmatpush3.bf16.msra.mxu0 %v3361_v27  ;;  %2406 = vmatprep.mubr.msk.bf16.mxu0 %vm2977_vm0, %v2976_v31  ;;  %v1084_v14 = vmul.f32 %v2648_v39, %v3495_v34  ;;  %2653 = vrcp.f32 %v1322_v38  ;;  %v2555_v38 = vld [vmem:[#allocation6 + $0x30] sm:$0xff]  }
 0x4a8   :  { %2416 = vmatprep.subr.bf16.mxu0 %v2976_v31  ;;  %2452 = vmatprep.subr.bf16.mxu1 %v2552_v35 }
 0x4a9   :  { %v1085_v41 = vpack.c.bf16 %v1084_v14, %v1083_v25  ;;  %v2556_v14 = vld [vmem:[#allocation6 + $0x38] sm:$0xff]  }
 0x4aa   :  { %v1440_v40 = vpop.xlane.xlu0 %1439  ;;  %2453 = vmatpush3.bf16.msra.mxu1 %v2552_v35 }
 0x4ab   :  { %2454 = vmatprep.subr.bf16.mxu1 %v2553_v37 }
 0x4ad   :  { %v2650_v42 = vpop.eup %2649 }
 0x4ae   :  { %2407 = vmatmul.mubr.msk.bf16.vlgmr.msra.gmra.mrb[28].mxu0 %vm550_vm2, %v1085_v41  ;;  %v2652_v51 = vpop.eup %2651  ;;  %v1204_v27 = vmul.f32 %v2650_v42, %v3509_v47  ;;  %v1443_v54 = vpop.xlane.xlu0 %1442  ;;  %2455 = vmatpush3.bf16.msra.mxu1 %v2553_v37 }
 0x4af   :  { %2417 = vmatpush3.bf16.msra.mxu0 %v1208_v48  ;;  %2418 = vmatprep.mubr.msk.bf16.mxu0 %vm2977_vm0, %v2976_v31  ;;  %v1203_v17 = vmul.f32 %v2652_v51, %v3505_v45 }
 0x4b0   :  { %2428 = vmatprep.subr.bf16.mxu0 %v2976_v31  ;;  %2456 = vmatprep.subr.bf16.mxu1 %v2554_v9 }
 0x4b1   :  { %v1205_v50 = vpack.c.bf16 %v1204_v27, %v1203_v17  ;;  %v2654_v47 = vpop.eup %2653 }
 0x4b2   :  { %v1329_v34 = vpop.permute.xlu0 %1328  ;;  %v1326_v22 = vmul.f32 %v2654_v47, %v3513_v57  ;;  %2457 = vmatpush3.bf16.msra.mxu1 %v2554_v9  ;;  %v2680_v9 = vld [vmem:[%s3697_s29 + $0x18] sm:$0xff] }
 0x4b3   :  { %2458 = vmatprep.subr.bf16.mxu1 %v2555_v38 }
 0x4b6   :  { %2419 = vmatmul.mubr.msk.bf16.vlgmr.msra.gmra.mrb[32].mxu0 %vm550_vm2, %v1205_v50  ;;  %2459 = vmatpush3.bf16.msra.mxu1 %v2555_v38 }
 0x4b7   :  { %2429 = vmatpush3.bf16.msra.mxu0 %v1329_v34  ;;  %2430 = vmatprep.mubr.msk.bf16.mxu0 %vm2977_vm0, %v2976_v31 }
 0x4b8   :  { %2440 = vmatprep.subr.bf16.mxu0 %v2976_v31  ;;  %2460 = vmatprep.subr.bf16.mxu1 %v2556_v14 }
 0x4ba   :  { %2461 = vmatpush3.bf16.msra.mxu1 %v2556_v14  ;;  %v2562_v14 = vld [vmem:[#allocation12 + $0x14] ss:$8 sps:$4 sm:$0xff]  }
 0x4cf   :  { %v1319_v24 = vpop.xlane.xlu1 %1318 }
 0x4d0   :  { %2655 = vrcp.f32 %v1319_v24 }
 0x4d1   :  { %2657 = vrcp.f32 %v1443_v54 }
 0x4d2   :  { %2659 = vrcp.f32 %v1440_v40 }
 0x4d3   :  { %v1450_v61 = vpop.permute.xlu1 %1449 }
 0x4da   :  { %v2656_v55 = vpop.eup %2655 }
 0x4db   :  { %v1325_v45 = vmul.f32 %v2656_v55, %v3537_v6  ;;  %v2658_v60 = vpop.eup %2657 }
 0x4dc   :  { %v2660_v20 = vpop.eup %2659  ;;  %v1447_v1 = vmul.f32 %v2658_v60, %v3528_v36 }
 0x4dd   :  { %v1327_v58 = vpack.c.bf16 %v1326_v22, %v1325_v45  ;;  %v1446_v3 = vmul.f32 %v2660_v20, %v3523_v63 }
 0x4df   :  { %2431 = vmatmul.mubr.msk.bf16.vlgmr.msra.gmra.mrb[36].mxu0 %vm550_vm2, %v1327_v58  ;;  %v1448_v5 = vpack.c.bf16 %v1447_v1, %v1446_v3 }
 0x4e0   :  { %2441 = vmatpush3.bf16.msra.mxu0 %v1450_v61  ;;  %2442 = vmatprep.mubr.msk.bf16.mxu0 %vm2977_vm0, %v2976_v31 }
 0x4e7   :  { %2443 = vmatmul.mubr.msk.bf16.vlgmr.msra.gmra.mrb[40].mxu0 %vm550_vm2, %v1448_v5 }
 0x4e8   :  { %1861 = vmatprep.mubr.bf16.mxu0 %v2975_v0 }
 0x4eb   :  { %v3583_v57 = vpop.f32.mrb[12].mxu0 }
 0x4ec   :  { %v2360_v6 = vpop.f32.mrb[13].mxu0 }
 0x4ed   :  { %v3585_v28 = vpop.f32.mrb[14].mxu0 }
 0x4ee   :  { %v2361_v7 = vpop.f32.mrb[15].mxu0 }
 0x53c   :  { %v735_v53 = vpop.f32.mrb[16].mxu0 }
 0x53d   :  { %v2372_v8 = vpop.f32.mrb[17].mxu0 }
 0x53e   :  { %v738_v15 = vpop.f32.mrb[18].mxu0 }
 0x53f   :  { %v2487_v56 = vpack.i.bf16 %v738_v15, %v735_v53  ;;  %v2373_v31 = vpop.f32.mrb[19].mxu0 }
 0x541   :  { %2488 = vrot.lane.b32.xlu1 %v2487_v56, %s2979_s7 }
 0x571   :  { %v856_v36 = vpop.f32.mrb[20].mxu0 }
 0x572   :  { %v2384_v63 = vpop.f32.mrb[21].mxu0 }
 0x573   :  { %v859_v11 = vpop.f32.mrb[22].mxu0 }
 0x574   :  { %v2492_v13 = vpack.i.bf16 %v859_v11, %v856_v36  ;;  %v2385_v62 = vpop.f32.mrb[23].mxu0 }
 0x576   :  { %2493 = vrot.lane.b32.xlu1 %v2492_v13, %s2966_s3 }
 0x579   :  { %v977_v16 = vpop.f32.mrb[24].mxu0 }
 0x57a   :  { %v2396_v4 = vpop.f32.mrb[25].mxu0 }
 0x57b   :  { %v980_v18 = vpop.f32.mrb[26].mxu0 }
 0x57c   :  { %v2497_v19 = vpack.i.bf16 %v980_v18, %v977_v16  ;;  %v2397_v21 = vpop.f32.mrb[27].mxu0 }
 0x57d   :  { %v2204_v21 = vld [vmem:[#allocation7] ss:$0 sm:$0xff] }
 0x57e   :  { %2498 = vrot.lane.b32.xlu1 %v2497_v19, %s2978_s4 }
 0x581   :  { %v3590_v49 = vpop.f32.mrb[28].mxu0 }
 0x582   :  { %v2408_v52 = vpop.f32.mrb[29].mxu0 }
 0x583   :  { %v3592_v23 = vpop.f32.mrb[30].mxu0 }
 0x584   :  { %v2409_v2 = vpop.f32.mrb[31].mxu0 }
 0x589   :  { %v1247_v12 = vpop.f32.mrb[32].mxu0 }
 0x58a   :  { %v2420_v32 = vpop.f32.mrb[33].mxu0 }
 0x58b   :  { %v1250_v33 = vpop.f32.mrb[34].mxu0 }
 0x58c   :  { %v2502_v10 = vpack.i.bf16 %v1250_v33, %v1247_v12  ;;  %v2421_v59 = vpop.f32.mrb[35].mxu0  ;;  %v2677_v12 = vld [vmem:[%s3697_s29] sm:$0xff]  ;;  %v2678_v33 = vld [vmem:[%s3697_s29 + $0x8] sm:$0xff] }
 0x58d   :  { %v2679_v59 = vld [vmem:[%s3697_s29 + $0x10] sm:$0xff] }
 0x58e   :  { %2503 = vrot.lane.b32.xlu1 %v2502_v10, %s2979_s7 }
 0x5b2   :  { %v1368_v39 = vpop.f32.mrb[36].mxu0 }
 0x5b3   :  { %v2432_v25 = vpop.f32.mrb[37].mxu0  ;;  %v2489_v50 = vpop.permute.xlu1 %2488 }
 0x5b4   :  { %v1371_v40 = vpop.f32.mrb[38].mxu0  ;;  %v2491_v24 = vunpack.i.h.bf16 %v2489_v50  ;;  %v2490_v47 = vunpack.i.l.bf16 %v2489_v50  ;;  %v2559_v25 = vld [vmem:[#allocation12 + $0x4] ss:$8 sps:$4 sm:$0xff]  }
 0x5b5   :  { %v2507_v41 = vpack.i.bf16 %v1371_v40, %v1368_v39  ;;  %v2433_v42 = vpop.f32.mrb[39].mxu0  ;;  %v2557_v39 = vld [vmem:[#allocation12] ss:$8 sps:$4 sm:$0xff]   ;;  %1829 = vmatprep.subr.bf16.mxu0 %v2559_v25  ;;  %v2560_v40 = vld [vmem:[#allocation12 + $0x10] ss:$8 sps:$4 sm:$0xff]  }
 0x5b6   :  { %v1009_v58 = vsel %vm502_vm1, %v3585_v28, %v2491_v24  ;;  %v1008_v60 = vsel %vm502_vm1, %v3583_v57, %v2490_v47  ;;  %1830 = vmatpush1.bf16.msra.mxu0 %v2557_v39 }
 0x5b7   :  { %2508 = vrot.lane.b32.xlu0 %v2507_v41, %s2966_s3  ;;  %1831 = vmatprep.subr.bf16.mxu0 %v2562_v14  ;;  %v2214_v14 = vld [vmem:[#allocation10] ss:$0 sm:$0xff] }
 0x5ba   :  { %v1489_v48 = vpop.f32.mrb[40].mxu0  ;;  %1832 = vmatpush1.bf16.msra.mxu0 %v2560_v40 }
 0x5bb   :  { %v2444_v51 = vpop.f32.mrb[41].mxu0 }
 0x5bc   :  { %v1492_v27 = vpop.f32.mrb[42].mxu0 }
 0x5bd   :  { %v2512_v54 = vpack.i.bf16 %v1492_v27, %v1489_v48  ;;  %v2445_v17 = vpop.f32.mrb[43].mxu0 }
 0x5bf   :  { %2513 = vrot.lane.b32.xlu1 %v2512_v54, %s2978_s4 }
 0x5e8   :  { %v2494_v34 = vpop.permute.xlu1 %2493 }
 0x5e9   :  { %v2496_v55 = vunpack.i.h.bf16 %v2494_v34  ;;  %v2495_v22 = vunpack.i.l.bf16 %v2494_v34 }
 0x5eb   :  { %v1012_v1 = vsel %vm1010_vm3, %v1009_v58, %v2496_v55  ;;  %v1011_v3 = vsel %vm1010_vm3, %v1008_v60, %v2495_v22 }
 0x5f0   :  { %v2499_v45 = vpop.permute.xlu1 %2498 }
 0x5f1   :  { %v2501_v61 = vunpack.i.h.bf16 %v2499_v45  ;;  %v2500_v20 = vunpack.i.l.bf16 %v2499_v45 }
 0x5f3   :  { %v1014_v5 = vsel %vm1013_vm4, %v1011_v3, %v2500_v20  ;;  %v1015_v6 = vsel %vm1013_vm4, %v1012_v1, %v2501_v61  ;;  %v2565_v61 = vld [vmem:[#allocation12 + $0x24] ss:$8 sps:$4 sm:$0xff]   ;;  %v2563_v20 = vld [vmem:[#allocation12 + $0x20] ss:$8 sps:$4 sm:$0xff]   ;;  %v2568_v1 = vld [vmem:[#allocation12 + $0x34] ss:$8 sps:$4 sm:$0xff]  }
 0x5f4   :  { %v1526_v7 = vpack.c.bf16 %v1015_v6, %v1014_v5  ;;  %1833 = vmatprep.subr.bf16.mxu0 %v2565_v61  ;;  %v2566_v3 = vld [vmem:[#allocation12 + $0x30] ss:$8 sps:$4 sm:$0xff]   ;;  %v2571_v5 = vld [vmem:[#allocation12 + $0x44] ss:$8 sps:$4 sm:$0xff]   ;;  %v2569_v6 = vld [vmem:[#allocation12 + $0x40] ss:$8 sps:$4 sm:$0xff]  }
 0x5f5   :  { %1834 = vmatpush1.bf16.msra.mxu0 %v2563_v20  ;;  %v1737_v61 = vld [vmem:[#allocation13] sm:$0x3] }
 0x5f6   :  { %2462 = vmatprep.mubr.bf16.mxu1 %v1526_v7  ;;  %1835 = vmatprep.subr.bf16.mxu0 %v2568_v1  ;;  %v2574_v7 = vld [vmem:[#allocation12 + $0x54] ss:$8 sps:$4 sm:$0xff]   ;;  %v1746_v20 = vrot.slane %v1737_v61, %v237_v46 }
 0x5f9   :  { %1836 = vmatpush1.bf16.msra.mxu0 %v2566_v3 }
 0x5fa   :  { %1837 = vmatprep.subr.bf16.mxu0 %v2571_v5 }
 0x5fd   :  { %1838 = vmatpush1.bf16.msra.mxu0 %v2569_v6 }
 0x5fe   :  { %1839 = vmatprep.subr.bf16.mxu0 %v2574_v7 }
 0x600   :  { %v2504_v53 = vpop.permute.xlu1 %2503 }
 0x601   :  { %v2506_v15 = vunpack.i.h.bf16 %v2504_v53  ;;  %v2505_v56 = vunpack.i.l.bf16 %v2504_v53  ;;  %v2572_v53 = vld [vmem:[#allocation12 + $0x50] ss:$8 sps:$4 sm:$0xff]  }
 0x602   :  { %1840 = vmatpush1.bf16.msra.mxu0 %v2572_v53 }
 0x603   :  { %v1521_v57 = vsel %vm502_vm1, %v3592_v23, %v2506_v15  ;;  %v1520_v63 = vsel %vm502_vm1, %v3590_v49, %v2505_v56  ;;  %v2577_v15 = vld [vmem:[#allocation12 + $0x64] ss:$8 sps:$4 sm:$0xff]   ;;  %v2580_v56 = vld [vmem:[#allocation12 + $0x74] ss:$8 sps:$4 sm:$0xff]  }
 0x604   :  { %1841 = vmatprep.subr.bf16.mxu0 %v2577_v15 }
 0x629   :  { %v2509_v8 = vpop.permute.xlu0 %2508 }
 0x62a   :  { %v2511_v28 = vunpack.i.h.bf16 %v2509_v8  ;;  %v2510_v31 = vunpack.i.l.bf16 %v2509_v8  ;;  %v2575_v8 = vld [vmem:[#allocation12 + $0x60] ss:$8 sps:$4 sm:$0xff]  }
 0x62b   :  { %1842 = vmatpush1.bf16.msra.mxu0 %v2575_v8 }
 0x62c   :  { %v1523_v62 = vsel %vm1010_vm3, %v1521_v57, %v2511_v28  ;;  %v1522_v16 = vsel %vm1010_vm3, %v1520_v63, %v2510_v31  ;;  %v2578_v28 = vld [vmem:[#allocation12 + $0x70] ss:$8 sps:$4 sm:$0xff]   ;;  %1843 = vmatprep.subr.bf16.mxu0 %v2580_v56  ;;  %v2581_v31 = vld [vmem:[#allocation15 + $0x40] sm:$0xff]  }
 0x62d   :  { %v2583_v57 = vld [vmem:[#allocation15 + $0x48] sm:$0xff]   ;;  %2302 = vmatprep.subr.bf16.mxu1 %v2581_v31 }
 0x62e   :  { %v2584_v63 = vld [vmem:[#allocation15 + $0x8] sm:$0xff]  }
 0x62f   :  { %1844 = vmatpush1.bf16.msra.mxu0 %v2578_v28 }
 0x631   :  { %v2514_v36 = vpop.permute.xlu1 %2513 }
 0x632   :  { %v2516_v11 = vunpack.i.h.bf16 %v2514_v36  ;;  %v2515_v13 = vunpack.i.l.bf16 %v2514_v36  ;;  %v2582_v36 = vld [vmem:[#allocation15] sm:$0xff]  }
 0x634   :  { %v1525_v4 = vsel %vm1013_vm4, %v1523_v62, %v2516_v11  ;;  %v1524_v18 = vsel %vm1013_vm4, %v1522_v16, %v2515_v13  ;;  %v2585_v11 = vld [vmem:[#allocation15 + $0x50] sm:$0xff]   ;;  %v2587_v62 = vld [vmem:[#allocation15 + $0x58] sm:$0xff]  }
 0x635   :  { %v1527_v19 = vpack.c.bf16 %v1525_v4, %v1524_v18  ;;  %v2586_v13 = vld [vmem:[#allocation15 + $0x10] sm:$0xff]   ;;  %v2588_v16 = vld [vmem:[#allocation15 + $0x18] sm:$0xff]   ;;  %v2589_v4 = vld [vmem:[#allocation15 + $0x60] sm:$0xff]  }
 0x636   :  { %v2590_v18 = vld [vmem:[#allocation15 + $0x20] sm:$0xff]  }
 0x637   :  { %2463 = vmatmul.mubr.bf16.vlgmr.msra.gmra.mrb[32].mxu1 %v1527_v19  ;;  %v2591_v19 = vld [vmem:[#allocation15 + $0x68] sm:$0xff]  }
 0x638   :  { %2303 = vmatpush3.bf16.msra.mxu1 %v2582_v36 }
 0x639   :  { %2304 = vmatprep.subr.bf16.mxu1 %v2583_v57 }
 0x63c   :  { %2305 = vmatpush3.bf16.msra.mxu1 %v2584_v63 }
 0x63d   :  { %2306 = vmatprep.subr.bf16.mxu1 %v2585_v11 }
 0x640   :  { %2307 = vmatpush3.bf16.msra.mxu1 %v2586_v13 }
 0x641   :  { %2308 = vmatprep.subr.bf16.mxu1 %v2587_v62 }
 0x644   :  { %2309 = vmatpush3.bf16.msra.mxu1 %v2588_v16 }
 0x645   :  { %2310 = vmatprep.subr.bf16.mxu1 %v2589_v4 }
 0x648   :  { %2311 = vmatpush3.bf16.msra.mxu1 %v2590_v18 }
 0x649   :  { %2312 = vmatprep.subr.bf16.mxu1 %v2591_v19 }
 0x70a   :  { %v2464_v52 = vpop.f32.mrb[32].mxu1 }
 0x70b   :  { %v1633_v26 = vpop.f32.mrb[33].mxu1  ;;  %v1642_v30 = vadd.f32 %v2464_v52, %v2204_v21 }
 0x70c   :  { %v1634_v29 = vadd.f32 %v2204_v21, %v1633_v26  ;;  %v2465_v23 = vpop.f32.mrb[34].mxu1 }
 0x70d   :  { %v1636_v2 = vpop.f32.mrb[35].mxu1  ;;  %v1645_v10 = vadd.f32 %v2465_v23, %v2204_v21  ;;  %v1650_v37 = vadd.f32 %v2679_v59, %v1642_v30  ;;  %v2213_v59 = vld [vmem:[#allocation9] ss:$0 sm:$0xff] }
 0x70e   :  { %v1637_v49 = vadd.f32 %v2204_v21, %v1636_v2  ;;  %v1648_v32 = vadd.f32 %v2677_v12, %v1634_v29 }
 0x70f   :  { %v1651_v38 = vadd.f32 %v2680_v9, %v1645_v10 }
 0x710   :  { %1654 = vadd.xlane.f32.xlu0 %v1648_v32  ;;  %v1649_v35 = vadd.f32 %v2678_v33, %v1637_v49 }
 0x712   :  { %1656 = vadd.xlane.f32.xlu1 %v1649_v35 }
 0x714   :  { %1658 = vadd.xlane.f32.xlu0 %v1650_v37 }
 0x718   :  { %1660 = vadd.xlane.f32.xlu0 %v1651_v38 }
 0x79d   :  { %v1655_v41 = vpop.xlane.xlu0 %1654 }
 0x79e   :  { %v1663_v42 = vmul.f32 0.0078125, %v1655_v41 }
 0x79f   :  { %v1657_v48 = vpop.xlane.xlu1 %1656 }
 0x7a0   :  { %v3625_v51 = vsub.f32 %v1648_v32, %v1663_v42  ;;  %v1664_v27 = vmul.f32 0.0078125, %v1657_v48 }
 0x7a1   :  { %v1659_v54 = vpop.xlane.xlu0 %1658 }
 0x7a2   :  { %v3627_v17 = vsub.f32 %v1649_v35, %v1664_v27  ;;  %v1665_v50 = vmul.f32 0.0078125, %v1659_v54  ;;  %v1671_v34 = vmul.f32 %v3625_v51, %v3625_v51 }
 0x7a4   :  { %v3631_v24 = vsub.f32 %v1650_v37, %v1665_v50  ;;  %1675 = vadd.xlane.f32.xlu1 %v1671_v34  ;;  %v1672_v47 = vmul.f32 %v3627_v17, %v3627_v17 }
 0x7a5   :  { %v1661_v55 = vpop.xlane.xlu0 %1660 }
 0x7a6   :  { %v1666_v22 = vmul.f32 0.0078125, %v1661_v55  ;;  %1677 = vadd.xlane.f32.xlu0 %v1672_v47  ;;  %v1673_v45 = vmul.f32 %v3631_v24, %v3631_v24 }
 0x7a8   :  { %v3637_v58 = vsub.f32 %v1651_v38, %v1666_v22  ;;  %1679 = vadd.xlane.f32.xlu1 %v1673_v45  ;;  %v2593_v22 = vld [vmem:[#allocation15 + $0x70] sm:$0xff]  }
 0x7a9   :  { %v2594_v45 = vld [vmem:[#allocation15 + $0x30] sm:$0xff]  }
 0x7aa   :  { %v1674_v60 = vmul.f32 %v3637_v58, %v3637_v58 }
 0x7ac   :  { %1681 = vadd.xlane.f32.xlu0 %v1674_v60  ;;  %v2596_v60 = vld [vmem:[#allocation15 + $0x38] sm:$0xff]  }
 0x831   :  { %v1676_v21 = vpop.xlane.xlu1 %1675 }
 0x832   :  { %v1683_v52 = vmul.f32 0.0078125, %v1676_v21 }
 0x833   :  { %v1678_v26 = vpop.xlane.xlu0 %1677 }
 0x834   :  { %v1687_v29 = vadd.f32 1e-05, %v1683_v52  ;;  %v1684_v23 = vmul.f32 0.0078125, %v1678_v26 }
 0x835   :  { %v1680_v2 = vpop.xlane.xlu1 %1679 }
 0x836   :  { %2661 = vrsqrt.f32 %v1687_v29  ;;  %v1688_v30 = vadd.f32 1e-05, %v1684_v23  ;;  %v1685_v49 = vmul.f32 0.0078125, %v1680_v2  ;;  %v2231_v2 = vld [vmem:[#allocation16] ss:$0 sm:$0xff] }
 0x838   :  { %2663 = vrsqrt.f32 %v1688_v30  ;;  %v1689_v12 = vadd.f32 1e-05, %v1685_v49 }
 0x839   :  { %v1682_v32 = vpop.xlane.xlu0 %1681 }
 0x83a   :  { %2665 = vrsqrt.f32 %v1689_v12  ;;  %v1686_v33 = vmul.f32 0.0078125, %v1682_v32 }
 0x83c   :  { %v1690_v35 = vadd.f32 1e-05, %v1686_v33 }
 0x83e   :  { %2667 = vrsqrt.f32 %v1690_v35 }
 0x840   :  { %v2662_v10 = vpop.eup %2661 }
 0x841   :  { %v1695_v37 = vmul.f32 %v2662_v10, %v3625_v51 }
 0x842   :  { %v2664_v9 = vpop.eup %2663 }
 0x843   :  { %v1696_v38 = vmul.f32 %v2664_v9, %v3627_v17  ;;  %v1705_v39 = vmul.f32 %v2213_v59, %v1695_v37 }
 0x844   :  { %v2666_v25 = vpop.eup %2665 }
 0x845   :  { %v1706_v40 = vmul.f32 %v2213_v59, %v1696_v38  ;;  %v3643_v41 = vadd.f32 %v2214_v14, %v1705_v39  ;;  %v1697_v48 = vmul.f32 %v2666_v25, %v3631_v24  ;;  %v2592_v24 = vld [vmem:[#allocation15 + $0x28] sm:$0xff]  }
 0x846   :  { %2313 = vmatpush3.bf16.msra.mxu1 %v2592_v24 }
 0x847   :  { %v3645_v42 = vadd.f32 %v2214_v14, %v1706_v40  ;;  %v1707_v51 = vmul.f32 %v2213_v59, %v1697_v48  ;;  %2314 = vmatprep.subr.bf16.mxu1 %v2593_v22 }
 0x848   :  { %v2668_v27 = vpop.eup %2667 }
 0x849   :  { %v1719_v54 = vpack.c.bf16 %v3645_v42, %v3643_v41  ;;  %v1698_v50 = vmul.f32 %v2668_v27, %v3637_v58  ;;  %v3654_v47 = vadd.f32 %v2214_v14, %v1707_v51  ;;  %v2595_v58 = vld [vmem:[#allocation15 + $0x78] sm:$0xff]  }
 0x84a   :  { %2315 = vmatpush3.bf16.msra.mxu1 %v2594_v45 }
 0x84b   :  { %1862 = vmatmul.mubr.bf16.vlgmr.msra.gmra.mrb[44].mxu0 %v1719_v54  ;;  %v1708_v34 = vmul.f32 %v2213_v59, %v1698_v50  ;;  %2316 = vmatprep.subr.bf16.mxu1 %v2595_v58 }
 0x84c   :  { %1871 = vmatprep.mubr.bf16.mxu0 %v2975_v0  ;;  %v1742_v0 = vrot.slane %v1737_v61, %v233_v44 }
 0x84d   :  { %v3652_v17 = vadd.f32 %v2214_v14, %v1708_v34 }
 0x84e   :  { %2317 = vmatpush3.bf16.msra.mxu1 %v2596_v60 }
 0x84f   :  { %v1720_v55 = vpack.c.bf16 %v3652_v17, %v3654_v47 }
 0x853   :  { %1872 = vmatmul.mubr.bf16.gmra.mrb[48].mxu0 %v1720_v55 }
 0x91e   :  { %v1863_v1 = vpop.f32.mrb[44].mxu0 }
 0x91f   :  { %v1864_v3 = vadd.f32 %v1863_v1, %v1742_v0  ;;  %v1865_v5 = vpop.f32.mrb[45].mxu0 }
 0x920   :  { %v1866_v6 = vadd.f32 %v1865_v5, %v1746_v20  ;;  %v1867_v7 = vpop.f32.mrb[46].mxu0 }
 0x921   :  { %v1868_v53 = vadd.f32 %v1867_v7, %v1742_v0  ;;  %v1869_v8 = vpop.f32.mrb[47].mxu0  ;;  %v1882_v56 = vmax.f32 %v1864_v3, 0.0 }
 0x922   :  { %v1870_v15 = vadd.f32 %v1869_v8, %v1746_v20  ;;  %v1883_v31 = vmax.f32 %v1866_v6, 0.0 }
 0x923   :  { %v1884_v28 = vmax.f32 %v1868_v53, 0.0 }
 0x924   :  { %v1885_v36 = vmax.f32 %v1870_v15, 0.0 }
 0x925   :  { %v1890_v57 = vpack.c.bf16 %v1884_v28, %v1882_v56 }
 0x926   :  { %v1891_v63 = vpack.c.bf16 %v1885_v36, %v1883_v31  ;;  %v1873_v11 = vpop.f32.mrb[48].mxu0 }
 0x927   :  { %v1874_v13 = vadd.f32 %v1873_v11, %v1742_v0  ;;  %v1875_v44 = vpop.f32.mrb[49].mxu0  ;;  %v2248_v11 = vld [vmem:[#allocation18] ss:$0 sm:$0xff] }
 0x928   :  { %v1876_v62 = vadd.f32 %v1875_v44, %v1746_v20  ;;  %v1877_v43 = vpop.f32.mrb[50].mxu0  ;;  %2061 = vmatprep.mubr.bf16.mxu1 %v1891_v63 }
 0x929   :  { %v1878_v46 = vadd.f32 %v1877_v43, %v1742_v0  ;;  %v1879_v16 = vpop.f32.mrb[51].mxu0  ;;  %2062 = vmatmul.mubr.bf16.vlgmr.msra.gmra.mrb[36].mxu1 %v1890_v57  ;;  %v1886_v18 = vmax.f32 %v1874_v13, 0.0 }
 0x92a   :  { %v1880_v4 = vadd.f32 %v1879_v16, %v1746_v20  ;;  %v1887_v21 = vmax.f32 %v1876_v62, 0.0  ;;  %v2249_v62 = vld [vmem:[#allocation19] ss:$0 sm:$0xff] }
 0x92b   :  { %v1888_v19 = vmax.f32 %v1878_v46, 0.0 }
 0x92c   :  { %v1889_v52 = vmax.f32 %v1880_v4, 0.0 }
 0x92d   :  { %v1892_v26 = vpack.c.bf16 %v1888_v19, %v1886_v18 }
 0x92e   :  { %v1893_v29 = vpack.c.bf16 %v1889_v52, %v1887_v21 }
 0x930   :  { %2069 = vmatprep.mubr.bf16.mxu1 %v1893_v29 }
 0x931   :  { %2070 = vmatmul.mubr.bf16.gmra.mrb[40].mxu1 %v1892_v26 }
 0x9fc   :  { %v2318_v23 = vpop.f32.mrb[36].mxu1 }
 0x9fd   :  { %v2319_v30 = vpop.f32.mrb[37].mxu1 }
 0x9fe   :  { %v2320_v49 = vadd.f32 %v2319_v30, %v2318_v23  ;;  %v2321_v12 = vpop.f32.mrb[38].mxu1 }
 0x9ff   :  { %v2322_v32 = vpop.f32.mrb[39].mxu1 }
 0xa00   :  { %v2064_v33 = vadd.f32 %v2320_v49, %v2231_v2  ;;  %v2323_v35 = vadd.f32 %v2322_v32, %v2321_v12 }
 0xa02   :  { %v2067_v10 = vadd.f32 %v2323_v35, %v2231_v2  ;;  %v2078_v59 = vadd.f32 %v2064_v33, %v3643_v41 }
 0xa04   :  { %v2324_v37 = vpop.f32.mrb[40].mxu1  ;;  %2084 = vadd.xlane.f32.xlu1 %v2078_v59  ;;  %v2079_v9 = vadd.f32 %v2067_v10, %v3645_v42 }
 0xa05   :  { %v2325_v38 = vpop.f32.mrb[41].mxu1 }
 0xa06   :  { %v2326_v39 = vadd.f32 %v2325_v38, %v2324_v37  ;;  %v2327_v25 = vpop.f32.mrb[42].mxu1  ;;  %2086 = vadd.xlane.f32.xlu0 %v2079_v9 }
 0xa07   :  { %v2328_v14 = vpop.f32.mrb[43].mxu1 }
 0xa08   :  { %v2072_v40 = vadd.f32 %v2326_v39, %v2231_v2  ;;  %v2329_v48 = vadd.f32 %v2328_v14, %v2327_v25 }
 0xa0a   :  { %v2075_v27 = vadd.f32 %v2329_v48, %v2231_v2  ;;  %v2080_v54 = vadd.f32 %v2072_v40, %v3654_v47 }
 0xa0c   :  { %2088 = vadd.xlane.f32.xlu1 %v2080_v54  ;;  %v2081_v50 = vadd.f32 %v2075_v27, %v3652_v17 }
 0xa0e   :  { %2090 = vadd.xlane.f32.xlu0 %v2081_v50 }
 0xa91   :  { %v2085_v51 = vpop.xlane.xlu1 %2084 }
 0xa92   :  { %v2092_v41 = vmul.f32 0.0078125, %v2085_v51 }
 0xa93   :  { %v2087_v34 = vpop.xlane.xlu0 %2086 }
 0xa94   :  { %v2096_v55 = vsub.f32 %v2078_v59, %v2092_v41  ;;  %v2093_v24 = vmul.f32 0.0078125, %v2087_v34 }
 0xa96   :  { %v2097_v42 = vsub.f32 %v2079_v9, %v2093_v24  ;;  %v2100_v22 = vmul.f32 %v2096_v55, %v2096_v55 }
 0xa98   :  { %2104 = vadd.xlane.f32.xlu1 %v2100_v22  ;;  %v2101_v45 = vmul.f32 %v2097_v42, %v2097_v42 }
 0xa99   :  { %v2089_v58 = vpop.xlane.xlu1 %2088 }
 0xa9a   :  { %v2094_v60 = vmul.f32 0.0078125, %v2089_v58  ;;  %2106 = vadd.xlane.f32.xlu0 %v2101_v45 }
 0xa9b   :  { %v2091_v61 = vpop.xlane.xlu0 %2090 }
 0xa9c   :  { %v2098_v0 = vsub.f32 %v2080_v54, %v2094_v60  ;;  %v2095_v20 = vmul.f32 0.0078125, %v2091_v61 }
 0xa9e   :  { %v2099_v47 = vsub.f32 %v2081_v50, %v2095_v20  ;;  %v2102_v1 = vmul.f32 %v2098_v0, %v2098_v0 }
 0xaa0   :  { %2108 = vadd.xlane.f32.xlu1 %v2102_v1  ;;  %v2103_v17 = vmul.f32 %v2099_v47, %v2099_v47 }
 0xaa2   :  { %2110 = vadd.xlane.f32.xlu0 %v2103_v17 }
 0xb25   :  { %v2105_v3 = vpop.xlane.xlu1 %2104 }
 0xb26   :  { %v2112_v5 = vmul.f32 0.0078125, %v2105_v3 }
 0xb27   :  { %v2107_v6 = vpop.xlane.xlu0 %2106 }
 0xb28   :  { %v2116_v7 = vadd.f32 1e-05, %v2112_v5  ;;  %v2113_v53 = vmul.f32 0.0078125, %v2107_v6 }
 0xb2a   :  { %2669 = vrsqrt.f32 %v2116_v7  ;;  %v2117_v8 = vadd.f32 1e-05, %v2113_v53 }
 0xb2c   :  { %2671 = vrsqrt.f32 %v2117_v8 }
 0xb2d   :  { %v2109_v15 = vpop.xlane.xlu1 %2108 }
 0xb2e   :  { %v2114_v56 = vmul.f32 0.0078125, %v2109_v15 }
 0xb2f   :  { %v2111_v28 = vpop.xlane.xlu0 %2110 }
 0xb30   :  { %v2118_v31 = vadd.f32 1e-05, %v2114_v56  ;;  %v2115_v36 = vmul.f32 0.0078125, %v2111_v28 }
 0xb32   :  { %2673 = vrsqrt.f32 %v2118_v31  ;;  %v2119_v57 = vadd.f32 1e-05, %v2115_v36 }
 0xb34   :  { %v2670_v63 = vpop.eup %2669  ;;  %2675 = vrsqrt.f32 %v2119_v57 }
 0xb35   :  { %v2124_v13 = vmul.f32 %v2670_v63, %v2096_v55 }
 0xb36   :  { %v2672_v44 = vpop.eup %2671 }
 0xb37   :  { %v2134_v43 = vmul.f32 %v2248_v11, %v2124_v13  ;;  %v2125_v46 = vmul.f32 %v2672_v44, %v2097_v42 }
 0xb39   :  { %v2144_v16 = vadd.f32 %v2249_v62, %v2134_v43  ;;  %v2135_v4 = vmul.f32 %v2248_v11, %v2125_v46 }
 0xb3b   :  { %2148 = vst [vmem:[%s3694_s16] sm:$0xff] %v2144_v16  ;;  %v2145_v18 = vadd.f32 %v2249_v62, %v2135_v4 }
 0xb3c   :  { %v2674_v19 = vpop.eup %2673 }
 0xb3d   :  { %2149 = vst [vmem:[%s3694_s16 + $0x8] sm:$0xff] %v2145_v18  ;;  %v2126_v21 = vmul.f32 %v2674_v19, %v2098_v0 }
 0xb3e   :  { %v2676_v52 = vpop.eup %2675 }
 0xb3f   :  { %v2136_v26 = vmul.f32 %v2248_v11, %v2126_v21  ;;  %v2127_v29 = vmul.f32 %v2676_v52, %v2099_v47 }
 0xb41   :  { %v2146_v23 = vadd.f32 %v2249_v62, %v2136_v26  ;;  %v2137_v2 = vmul.f32 %v2248_v11, %v2127_v29 }
 0xb43   :  { %2150 = vst [vmem:[%s3694_s16 + $0x10] sm:$0xff] %v2146_v23  ;;  %v2147_v30 = vadd.f32 %v2249_v62, %v2137_v2 }
 0xb45   :  { %2151 = vst [vmem:[%s3694_s16 + $0x18] sm:$0xff] %v2147_v30 }
 0xb46   :  { %2156 = vsyncpa [#allocation3], 1 }
 0xb47   :  { %2157 = vsyncpa [#allocation5], 1 }
 0xb48   :  { %2158 = vsyncpa [#allocation8], 1 }
 0xb49   :  { %2159 = vsyncpa [#allocation11], 1 }
 0xb4a   :  { %2160 = vsyncpa [#allocation14], 1 }
 0xb4b   :  { %2161 = vsyncpa [#allocation17], 1 }
 0xb4c   :  { %2162 = vsyncpa [#allocation20], 1 }

</bundles_post_ra>
